<compile_context>
chip_gen: v7x
topology: tpu7x:2x2x1
jax: 0.10.0
libtpu: 0.0.40
codegen_flags: <defaults>
</compile_context>

<pallas_src>
import functools

import jax
import jax.numpy as jnp
from jax import lax
from jax.experimental import pallas as pl
from jax.experimental.pallas import tpu as pltpu


LANE = 128  # TPU lane width; feature dims are padded up to a multiple of this


def _round_up(v, m):
    return (v + m - 1) // m * m


def _pad2d(a, rows, cols, dtype):
    r, c = a.shape
    return jnp.pad(a, ((0, rows - r), (0, cols - c))).astype(dtype)


def _encoder_kernel(adj_ref, x_ref, w1_ref, b1_ref, w2_ref, b2_ref,   # inputs
                    o_ref,                                            # output
                    h_a_ref, h_b_ref, acc_ref,                        # scratch
                    *, k1, tile):
    """One grid step of the tiled NewEncoder forward.

    grid = (hop, i, k):
      hop : propagation step index (0 .. K1+K2-1), sequential, outermost
      i   : row tile of this hop's output
      k   : column tile of the normalized adjacency (reduction, innermost)

    h_a / h_b are persistent full-height bf16 VMEM scratches holding the node
    features between hops (even hops read h_a -> write h_b, odd hops the
    reverse). The adjacency streams through VMEM as bf16 (tile, tile) blocks.
    """
    hop = pl.program_id(0)
    i = pl.program_id(1)
    k = pl.program_id(2)
    nk = pl.num_programs(2)

    # ---- prologue (runs once): conv0 linear   h0 = x @ W1 + b1  -> h_a ----
    @pl.when((hop == 0) & (i == 0) & (k == 0))
    def _():
        h0 = jnp.dot(x_ref[...], w1_ref[...],
                     preferred_element_type=jnp.float32) + b1_ref[...]
        h_a_ref[...] = h0.astype(h_a_ref.dtype)

    # ---- between conv0 and conv1 (after K1 hops): ReLU + conv1 linear ----
    mid_ref = h_a_ref if (k1 % 2 == 0) else h_b_ref     # static slot choice

    @pl.when((hop == k1) & (i == 0) & (k == 0))
    def _():
        g = jnp.maximum(mid_ref[...], 0)                 # activation (ReLU)
        h1 = jnp.dot(g, w2_ref[...],
                     preferred_element_type=jnp.float32) + b2_ref[...]
        mid_ref[...] = h1.astype(mid_ref.dtype)

    # ---- propagation:  out_row_tile(i) = sum_k  A_hat[i, k] @ h[k] ----
    @pl.when(k == 0)
    def _():
        acc_ref[...] = jnp.zeros_like(acc_ref)

    parity = lax.rem(hop, 2)
    koff = pl.multiple_of(k * tile, tile)

    @pl.when(parity == 0)
    def _():
        acc_ref[...] += jnp.dot(adj_ref[...], h_a_ref[pl.ds(koff, tile), :],
                                preferred_element_type=jnp.float32)

    @pl.when(parity == 1)
    def _():
        acc_ref[...] += jnp.dot(adj_ref[...], h_b_ref[pl.ds(koff, tile), :],
                                preferred_element_type=jnp.float32)

    # ---- finalize this row tile of this hop ----
    last_k = k == nk - 1
    ioff = pl.multiple_of(i * tile, tile)

    @pl.when(last_k)
    def _():
        # Written every hop; the final hop's flush is the kernel result.
        o_ref[...] = acc_ref[...]

    @pl.when(last_k & (parity == 0))
    def _():
        h_b_ref[pl.ds(ioff, tile), :] = acc_ref[...].astype(h_b_ref.dtype)

    @pl.when(last_k & (parity == 1))
    def _():
        h_a_ref[pl.ds(ioff, tile), :] = acc_ref[...].astype(h_a_ref.dtype)


def build_norm_adj(edge_index, num_nodes):
    """Glue: dense symmetric-normalized adjacency with self loops.

    NOTE: duplicate edges collapse to weight 1 (.set, not scatter-add) and the
    graph is treated as undirected; the in-script reference uses the same
    construction, so the self-test is apples-to-apples.
    """
    src = edge_index[0]
    dst = edge_index[1]
    adj = jnp.zeros((num_nodes, num_nodes), jnp.float32)
    adj = adj.at[dst, src].set(1.0)
    adj = adj.at[src, dst].set(1.0)            # undirected
    idx = jnp.arange(num_nodes)
    adj = adj.at[idx, idx].set(1.0)            # self loops
    deg = adj.sum(axis=1)
    d_inv_sqrt = 1.0 / jnp.sqrt(jnp.maximum(deg, 1.0))
    return adj * d_inv_sqrt[:, None] * d_inv_sqrt[None, :]


def new_encoder_forward(x, edge_index, params, K1=2, K2=2, tile=None):
    """Pallas-backed forward of NewEncoder (final=True path => K1=K2=2)."""
    assert K1 >= 1 and K2 >= 1, "this kernel implements the final=True path"
    N, Fin = x.shape
    w1, b1, w2, b2 = params
    H = w1.shape[1]
    Fout = w2.shape[1]

    # Lane-dense padding: features -> multiple of 128 lanes; nodes -> multiple
    # of the row/reduction tile (256 for v6e/v7x MXU when big enough, else 128
    # which also matches v5e's 128x128 MXU tiles).
    F = _round_up(max(H, Fout), LANE)
    Fin_p = _round_up(Fin, LANE)
    if tile is None:
        tile = 256 if _round_up(N, 256) >= 512 else 128
    Np = _round_up(N, tile)

    adj = build_norm_adj(edge_index, N)

    # bf16 MXU operands (f32 accumulation inside the kernel); halves adjacency
    # HBM/VMEM traffic. Biases stay f32 (VPU adds; friendly to v5e's f32 VPU).
    adj_p = _pad2d(adj, Np, Np, jnp.bfloat16)
    x_p = _pad2d(x, Np, Fin_p, jnp.bfloat16)
    w1_p = _pad2d(w1, Fin_p, F, jnp.bfloat16)
    w2_p = _pad2d(w2, F, F, jnp.bfloat16)
    b1_p = _pad2d(b1.reshape(1, -1), 1, F, jnp.float32)
    b2_p = _pad2d(b2.reshape(1, -1), 1, F, jnp.float32)

    n_tiles = Np // tile
    grid = (K1 + K2, n_tiles, n_tiles)

    kernel = functools.partial(_encoder_kernel, k1=K1, tile=tile)

    grid_spec = pltpu.PrefetchScalarGridSpec(
        num_scalar_prefetch=0,
        grid=grid,
        in_specs=[
            # adjacency streams tile-by-tile (auto double-buffered DMA)
            pl.BlockSpec((tile, tile), lambda h, i, k: (i, k)),
            # grid-invariant operands: fetched once, resident for the run
            pl.BlockSpec((Np, Fin_p), lambda h, i, k: (0, 0)),
            pl.BlockSpec((Fin_p, F), lambda h, i, k: (0, 0)),
            pl.BlockSpec((1, F), lambda h, i, k: (0, 0)),
            pl.BlockSpec((F, F), lambda h, i, k: (0, 0)),
            pl.BlockSpec((1, F), lambda h, i, k: (0, 0)),
        ],
        out_specs=pl.BlockSpec((tile, F), lambda h, i, k: (i, 0)),
        scratch_shapes=[
            pltpu.VMEM((Np, F), jnp.bfloat16),   # h ping (persistent features)
            pltpu.VMEM((Np, F), jnp.bfloat16),   # h pong
            pltpu.VMEM((tile, F), jnp.float32),  # f32 row-tile accumulator
        ],
    )

    out = pl.pallas_call(
        kernel,
        out_shape=jax.ShapeDtypeStruct((Np, F), jnp.float32),
        grid_spec=grid_spec,
        compiler_params=pltpu.CompilerParams(
            # hop/i/k all sequential: every row tile of hop h feeds every row
            # tile of hop h+1 through per-core VMEM scratch, so the i axis
            # cannot be sharded across TensorCores with this design.
            dimension_semantics=("arbitrary", "arbitrary", "arbitrary"),
            vmem_limit_bytes=48 * 1024 * 1024,
        ),
    )(adj_p, x_p, w1_p, b1_p, w2_p, b2_p)

    return out[:N, :Fout]


def init_params(key, in_channels, out_channels):
    """Deterministic glorot-ish init for the two conv layers (k=2, hi=1)."""
    k1, k2, k3, k4 = jax.random.split(key, 4)
    s1 = (6.0 / (in_channels + out_channels)) ** 0.5
    s2 = (6.0 / (out_channels + out_channels)) ** 0.5
    w1 = jax.random.uniform(k1, (in_channels, out_channels), jnp.float32, -s1, s1)
    b1 = jax.random.uniform(k2, (1, out_channels), jnp.float32, -0.1, 0.1)
    w2 = jax.random.uniform(k3, (out_channels, out_channels), jnp.float32, -s2, s2)
    b2 = jax.random.uniform(k4, (1, out_channels), jnp.float32, -0.1, 0.1)
    return (w1, b1, w2, b2)


if __name__ == "__main__":
    key = jax.random.PRNGKey(0)
    k_x, k_e, k_p = jax.random.split(key, 3)

    N = 200           # number of graph nodes (pads to 256 -> 2x2 adj tiles)
    IN_CH = 48        # in_channels (pads to 128 lanes)
    OUT_CH = 32       # out_channels (pads to 128 lanes)
    E = 600           # number of (directed) edges

    x = jax.random.normal(k_x, (N, IN_CH), jnp.float32)
    edge_index = jax.random.randint(k_e, (2, E), 0, N, jnp.int32)

    params = init_params(k_p, IN_CH, OUT_CH)

    # final=True path of the PyTorch forward => K1 = K2 = 2 (deterministic).
    out = new_encoder_forward(x, edge_index, params, K1=2, K2=2)
    out = jax.block_until_ready(out)

    # Pure-JAX f32 reference for a sanity check.
    adj = build_norm_adj(edge_index, N)
    w1, b1, w2, b2 = params
    h = x @ w1 + b1
    for _ in range(2):
        h = adj @ h
    h = jnp.maximum(h, 0.0)
    h = h @ w2 + b2
    for _ in range(2):
        h = adj @ h

    assert out.shape == (N, OUT_CH)
    # Loose tolerance: kernel feeds the MXU bf16 operands (f32 accumulation),
    # the reference is pure f32. Structural bugs would differ by O(1).
    assert jnp.allclose(out, h, atol=1e-1, rtol=1e-1), \
        float(jnp.max(jnp.abs(out - h)))

    print("KERNEL_OK")
</pallas_src>

<mosaic_0001>
module attributes {stable_mosaic.version = 11 : i64} {
  func.func @_encoder_kernel(%arg0: i32, %arg1: i32, %arg2: i32, %arg3: memref<128x128xbf16, #tpu.memory_space<vmem>>, %arg4: memref<256x128xbf16, #tpu.memory_space<vmem>>, %arg5: memref<128x128xbf16, #tpu.memory_space<vmem>>, %arg6: memref<1x128xf32, #tpu.memory_space<vmem>>, %arg7: memref<128x128xbf16, #tpu.memory_space<vmem>>, %arg8: memref<1x128xf32, #tpu.memory_space<vmem>>, %arg9: memref<128x128xf32, #tpu.memory_space<vmem>>, %arg10: memref<256x128xbf16, #tpu.memory_space<vmem>>, %arg11: memref<256x128xbf16, #tpu.memory_space<vmem>>, %arg12: memref<128x128xf32, #tpu.memory_space<vmem>>) attributes {dimension_semantics = [#tpu.dimension_semantics<arbitrary>, #tpu.dimension_semantics<arbitrary>, #tpu.dimension_semantics<arbitrary>], iteration_bounds = array<i64: 4, 2, 2>, scalar_prefetch = 0 : i64, scratch_operands = 3 : i64, tpu.core_type = #tpu.core_type<tc>, window_params = [{transform_indices = @transform_0, window_bounds = array<i64: 128, 128>}, {pipeline_mode = #tpu.pipeline_mode<synchronous>, transform_indices = @transform_1, window_bounds = array<i64: 256, 128>}, {pipeline_mode = #tpu.pipeline_mode<synchronous>, transform_indices = @transform_2, window_bounds = array<i64: 128, 128>}, {pipeline_mode = #tpu.pipeline_mode<synchronous>, transform_indices = @transform_3, window_bounds = array<i64: 1, 128>}, {pipeline_mode = #tpu.pipeline_mode<synchronous>, transform_indices = @transform_4, window_bounds = array<i64: 128, 128>}, {pipeline_mode = #tpu.pipeline_mode<synchronous>, transform_indices = @transform_5, window_bounds = array<i64: 1, 128>}, {transform_indices = @transform_6, window_bounds = array<i64: 128, 128>}]} {
    %c0_i32 = arith.constant 0 : i32
    %0 = arith.cmpi eq, %arg0, %c0_i32 : i32
    %c0_i32_0 = arith.constant 0 : i32
    %1 = arith.cmpi eq, %arg1, %c0_i32_0 : i32
    %2 = arith.andi %0, %1 : i1
    %c0_i32_1 = arith.constant 0 : i32
    %3 = arith.cmpi eq, %arg2, %c0_i32_1 : i32
    %4 = arith.andi %2, %3 : i1
    %5 = arith.extui %4 : i1 to i32
    %c0_i32_2 = arith.constant 0 : i32
    %6 = arith.cmpi ne, %5, %c0_i32_2 : i32
    scf.if %6 {
      %c0 = arith.constant 0 : index
      %c0_19 = arith.constant 0 : index
      %39 = vector.load %arg4[%c0, %c0_19] : memref<256x128xbf16, #tpu.memory_space<vmem>>, vector<256x128xbf16>
      %c0_20 = arith.constant 0 : index
      %c0_21 = arith.constant 0 : index
      %40 = vector.load %arg5[%c0_20, %c0_21] : memref<128x128xbf16, #tpu.memory_space<vmem>>, vector<128x128xbf16>
      %cst = arith.constant dense<0.000000e+00> : vector<256x128xf32>
      %41 = tpu.matmul %39, %40, %cst {dimension_numbers = #tpu.dot_dimension_numbers<[1], [0], [0], [1], [0, 0, 1, 1], [], []>} : vector<256x128xbf16>, vector<128x128xbf16>, vector<256x128xf32> -> vector<256x128xf32>
      %c0_22 = arith.constant 0 : index
      %c0_23 = arith.constant 0 : index
      %42 = vector.load %arg6[%c0_22, %c0_23] : memref<1x128xf32, #tpu.memory_space<vmem>>, vector<1x128xf32>
      %43 = vector.broadcast %42 : vector<1x128xf32> to vector<256x128xf32>
      %44 = arith.addf %41, %43 : vector<256x128xf32>
      %45 = arith.truncf %44 : vector<256x128xf32> to vector<256x128xbf16>
      %c0_24 = arith.constant 0 : index
      %c0_25 = arith.constant 0 : index
      %46 = vector.load %arg10[%c0_24, %c0_25] : memref<256x128xbf16, #tpu.memory_space<vmem>>, vector<256x128xbf16>
      tpu.vector_store %arg10[%c0_24, %c0_25], %45 {strides = array<i32>} : memref<256x128xbf16, #tpu.memory_space<vmem>>, vector<256x128xbf16>,
    } else {
    }
    %c2_i32 = arith.constant 2 : i32
    %7 = arith.cmpi eq, %arg0, %c2_i32 : i32
    %c0_i32_3 = arith.constant 0 : i32
    %8 = arith.cmpi eq, %arg1, %c0_i32_3 : i32
    %9 = arith.andi %7, %8 : i1
    %c0_i32_4 = arith.constant 0 : i32
    %10 = arith.cmpi eq, %arg2, %c0_i32_4 : i32
    %11 = arith.andi %9, %10 : i1
    %12 = arith.extui %11 : i1 to i32
    %c0_i32_5 = arith.constant 0 : i32
    %13 = arith.cmpi ne, %12, %c0_i32_5 : i32
    scf.if %13 {
      %c0 = arith.constant 0 : index
      %c0_19 = arith.constant 0 : index
      %39 = vector.load %arg10[%c0, %c0_19] : memref<256x128xbf16, #tpu.memory_space<vmem>>, vector<256x128xbf16>
      %cst = arith.constant 0.000000e+00 : bf16
      %40 = vector.broadcast %cst : bf16 to vector<256x128xbf16>
      %41 = arith.maximumf %39, %40 : vector<256x128xbf16>
      %c0_20 = arith.constant 0 : index
      %c0_21 = arith.constant 0 : index
      %42 = vector.load %arg7[%c0_20, %c0_21] : memref<128x128xbf16, #tpu.memory_space<vmem>>, vector<128x128xbf16>
      %cst_22 = arith.constant dense<0.000000e+00> : vector<256x128xf32>
      %43 = tpu.matmul %41, %42, %cst_22 {dimension_numbers = #tpu.dot_dimension_numbers<[1], [0], [0], [1], [0, 0, 1, 1], [], []>} : vector<256x128xbf16>, vector<128x128xbf16>, vector<256x128xf32> -> vector<256x128xf32>
      %c0_23 = arith.constant 0 : index
      %c0_24 = arith.constant 0 : index
      %44 = vector.load %arg8[%c0_23, %c0_24] : memref<1x128xf32, #tpu.memory_space<vmem>>, vector<1x128xf32>
      %45 = vector.broadcast %44 : vector<1x128xf32> to vector<256x128xf32>
      %46 = arith.addf %43, %45 : vector<256x128xf32>
      %47 = arith.truncf %46 : vector<256x128xf32> to vector<256x128xbf16>
      %c0_25 = arith.constant 0 : index
      %c0_26 = arith.constant 0 : index
      %48 = vector.load %arg10[%c0_25, %c0_26] : memref<256x128xbf16, #tpu.memory_space<vmem>>, vector<256x128xbf16>
      tpu.vector_store %arg10[%c0_25, %c0_26], %47 {strides = array<i32>} : memref<256x128xbf16, #tpu.memory_space<vmem>>, vector<256x128xbf16>,
    } else {
    }
    %c0_i32_6 = arith.constant 0 : i32
    %14 = arith.cmpi eq, %arg2, %c0_i32_6 : i32
    %15 = arith.extui %14 : i1 to i32
    %c0_i32_7 = arith.constant 0 : i32
    %16 = arith.cmpi ne, %15, %c0_i32_7 : i32
    scf.if %16 {
      %cst = arith.constant 0.000000e+00 : f32
      %39 = vector.broadcast %cst : f32 to vector<128x128xf32>
      %c0 = arith.constant 0 : index
      %c0_19 = arith.constant 0 : index
      %40 = vector.load %arg12[%c0, %c0_19] : memref<128x128xf32, #tpu.memory_space<vmem>>, vector<128x128xf32>
      tpu.vector_store %arg12[%c0, %c0_19], %39 {strides = array<i32>} : memref<128x128xf32, #tpu.memory_space<vmem>>, vector<128x128xf32>,
    } else {
    }
    %c2_i32_8 = arith.constant 2 : i32
    %17 = arith.remsi %arg0, %c2_i32_8 : i32
    %c128_i32 = arith.constant 128 : i32
    %18 = arith.muli %arg2, %c128_i32 : i32
    %19 = tpu.assume_multiple %18, 128 : i32
    %c0_i32_9 = arith.constant 0 : i32
    %20 = arith.cmpi eq, %17, %c0_i32_9 : i32
    %21 = arith.extui %20 : i1 to i32
    %c0_i32_10 = arith.constant 0 : i32
    %22 = arith.cmpi ne, %21, %c0_i32_10 : i32
    scf.if %22 {
      %c0 = arith.constant 0 : index
      %c0_19 = arith.constant 0 : index
      %39 = vector.load %arg12[%c0, %c0_19] : memref<128x128xf32, #tpu.memory_space<vmem>>, vector<128x128xf32>
      %c0_20 = arith.constant 0 : index
      %c0_21 = arith.constant 0 : index
      %40 = vector.load %arg3[%c0_20, %c0_21] : memref<128x128xbf16, #tpu.memory_space<vmem>>, vector<128x128xbf16>
      %41 = arith.index_cast %19 : i32 to index
      %c0_22 = arith.constant 0 : index
      %42 = vector.load %arg10[%41, %c0_22] : memref<256x128xbf16, #tpu.memory_space<vmem>>, vector<128x128xbf16>
      %cst = arith.constant dense<0.000000e+00> : vector<128x128xf32>
      %43 = tpu.matmul %40, %42, %cst {dimension_numbers = #tpu.dot_dimension_numbers<[1], [0], [0], [1], [0, 0, 1, 1], [], []>} : vector<128x128xbf16>, vector<128x128xbf16>, vector<128x128xf32> -> vector<128x128xf32>
      %44 = arith.addf %39, %43 : vector<128x128xf32>
      %c0_23 = arith.constant 0 : index
      %c0_24 = arith.constant 0 : index
      %45 = vector.load %arg12[%c0_23, %c0_24] : memref<128x128xf32, #tpu.memory_space<vmem>>, vector<128x128xf32>
      tpu.vector_store %arg12[%c0_23, %c0_24], %44 {strides = array<i32>} : memref<128x128xf32, #tpu.memory_space<vmem>>, vector<128x128xf32>,
    } else {
    }
    %c1_i32 = arith.constant 1 : i32
    %23 = arith.cmpi eq, %17, %c1_i32 : i32
    %24 = arith.extui %23 : i1 to i32
    %c0_i32_11 = arith.constant 0 : i32
    %25 = arith.cmpi ne, %24, %c0_i32_11 : i32
    scf.if %25 {
      %c0 = arith.constant 0 : index
      %c0_19 = arith.constant 0 : index
      %39 = vector.load %arg12[%c0, %c0_19] : memref<128x128xf32, #tpu.memory_space<vmem>>, vector<128x128xf32>
      %c0_20 = arith.constant 0 : index
      %c0_21 = arith.constant 0 : index
      %40 = vector.load %arg3[%c0_20, %c0_21] : memref<128x128xbf16, #tpu.memory_space<vmem>>, vector<128x128xbf16>
      %41 = arith.index_cast %19 : i32 to index
      %c0_22 = arith.constant 0 : index
      %42 = vector.load %arg11[%41, %c0_22] : memref<256x128xbf16, #tpu.memory_space<vmem>>, vector<128x128xbf16>
      %cst = arith.constant dense<0.000000e+00> : vector<128x128xf32>
      %43 = tpu.matmul %40, %42, %cst {dimension_numbers = #tpu.dot_dimension_numbers<[1], [0], [0], [1], [0, 0, 1, 1], [], []>} : vector<128x128xbf16>, vector<128x128xbf16>, vector<128x128xf32> -> vector<128x128xf32>
      %44 = arith.addf %39, %43 : vector<128x128xf32>
      %c0_23 = arith.constant 0 : index
      %c0_24 = arith.constant 0 : index
      %45 = vector.load %arg12[%c0_23, %c0_24] : memref<128x128xf32, #tpu.memory_space<vmem>>, vector<128x128xf32>
      tpu.vector_store %arg12[%c0_23, %c0_24], %44 {strides = array<i32>} : memref<128x128xf32, #tpu.memory_space<vmem>>, vector<128x128xf32>,
    } else {
    }
    %c1_i32_12 = arith.constant 1 : i32
    %26 = arith.cmpi eq, %arg2, %c1_i32_12 : i32
    %c128_i32_13 = arith.constant 128 : i32
    %27 = arith.muli %arg1, %c128_i32_13 : i32
    %28 = tpu.assume_multiple %27, 128 : i32
    %29 = arith.extui %26 : i1 to i32
    %c0_i32_14 = arith.constant 0 : i32
    %30 = arith.cmpi ne, %29, %c0_i32_14 : i32
    scf.if %30 {
      %c0 = arith.constant 0 : index
      %c0_19 = arith.constant 0 : index
      %39 = vector.load %arg12[%c0, %c0_19] : memref<128x128xf32, #tpu.memory_space<vmem>>, vector<128x128xf32>
      %c0_20 = arith.constant 0 : index
      %c0_21 = arith.constant 0 : index
      %40 = vector.load %arg9[%c0_20, %c0_21] : memref<128x128xf32, #tpu.memory_space<vmem>>, vector<128x128xf32>
      tpu.vector_store %arg9[%c0_20, %c0_21], %39 {strides = array<i32>} : memref<128x128xf32, #tpu.memory_space<vmem>>, vector<128x128xf32>,
    } else {
    }
    %c0_i32_15 = arith.constant 0 : i32
    %31 = arith.cmpi eq, %17, %c0_i32_15 : i32
    %32 = arith.andi %26, %31 : i1
    %33 = arith.extui %32 : i1 to i32
    %c0_i32_16 = arith.constant 0 : i32
    %34 = arith.cmpi ne, %33, %c0_i32_16 : i32
    scf.if %34 {
      %c0 = arith.constant 0 : index
      %c0_19 = arith.constant 0 : index
      %39 = vector.load %arg12[%c0, %c0_19] : memref<128x128xf32, #tpu.memory_space<vmem>>, vector<128x128xf32>
      %40 = arith.truncf %39 : vector<128x128xf32> to vector<128x128xbf16>
      %41 = arith.index_cast %28 : i32 to index
      %c0_20 = arith.constant 0 : index
      %42 = vector.load %arg11[%41, %c0_20] : memref<256x128xbf16, #tpu.memory_space<vmem>>, vector<128x128xbf16>
      tpu.vector_store %arg11[%41, %c0_20], %40 {strides = array<i32>} : memref<256x128xbf16, #tpu.memory_space<vmem>>, vector<128x128xbf16>,
    } else {
    }
    %c1_i32_17 = arith.constant 1 : i32
    %35 = arith.cmpi eq, %17, %c1_i32_17 : i32
    %36 = arith.andi %26, %35 : i1
    %37 = arith.extui %36 : i1 to i32
    %c0_i32_18 = arith.constant 0 : i32
    %38 = arith.cmpi ne, %37, %c0_i32_18 : i32
    scf.if %38 {
      %c0 = arith.constant 0 : index
      %c0_19 = arith.constant 0 : index
      %39 = vector.load %arg12[%c0, %c0_19] : memref<128x128xf32, #tpu.memory_space<vmem>>, vector<128x128xf32>
      %40 = arith.truncf %39 : vector<128x128xf32> to vector<128x128xbf16>
      %41 = arith.index_cast %28 : i32 to index
      %c0_20 = arith.constant 0 : index
      %42 = vector.load %arg10[%41, %c0_20] : memref<256x128xbf16, #tpu.memory_space<vmem>>, vector<128x128xbf16>
      tpu.vector_store %arg10[%41, %c0_20], %40 {strides = array<i32>} : memref<256x128xbf16, #tpu.memory_space<vmem>>, vector<128x128xbf16>,
    } else {
    }
    return
  }
  func.func @transform_0(%arg0: i32, %arg1: i32, %arg2: i32) -> (i32, i32) {
    %c0_i32 = arith.constant 0 : i32
    return %arg1, %arg2 : i32, i32
  }
  func.func @transform_1(%arg0: i32, %arg1: i32, %arg2: i32) -> (i32, i32) {
    %c0_i32 = arith.constant 0 : i32
    %c0_i32_0 = arith.constant 0 : i32
    %c0_i32_1 = arith.constant 0 : i32
    return %c0_i32, %c0_i32_0 : i32, i32
  }
  func.func @transform_2(%arg0: i32, %arg1: i32, %arg2: i32) -> (i32, i32) {
    %c0_i32 = arith.constant 0 : i32
    %c0_i32_0 = arith.constant 0 : i32
    %c0_i32_1 = arith.constant 0 : i32
    return %c0_i32, %c0_i32_0 : i32, i32
  }
  func.func @transform_3(%arg0: i32, %arg1: i32, %arg2: i32) -> (i32, i32) {
    %c0_i32 = arith.constant 0 : i32
    %c0_i32_0 = arith.constant 0 : i32
    %c0_i32_1 = arith.constant 0 : i32
    return %c0_i32, %c0_i32_0 : i32, i32
  }
  func.func @transform_4(%arg0: i32, %arg1: i32, %arg2: i32) -> (i32, i32) {
    %c0_i32 = arith.constant 0 : i32
    %c0_i32_0 = arith.constant 0 : i32
    %c0_i32_1 = arith.constant 0 : i32
    return %c0_i32, %c0_i32_0 : i32, i32
  }
  func.func @transform_5(%arg0: i32, %arg1: i32, %arg2: i32) -> (i32, i32) {
    %c0_i32 = arith.constant 0 : i32
    %c0_i32_0 = arith.constant 0 : i32
    %c0_i32_1 = arith.constant 0 : i32
    return %c0_i32, %c0_i32_0 : i32, i32
  }
  func.func @transform_6(%arg0: i32, %arg1: i32, %arg2: i32) -> (i32, i32) {
    %c0_i32 = arith.constant 0 : i32
    %c0_i32_0 = arith.constant 0 : i32
    return %arg1, %c0_i32 : i32, i32
  }
}

</mosaic_0001>

<bundles_post_ra>
// kernel: tpu_custom_call.1
= control target key start
LH: loop header
LB: loop body
LE: loop exit
PB: predicated region body
PF: predicated region fallthrough
CT: control target
= control target key end

     0   :  { %s3238_s0 = inlined_call_operand.hbm [shape: bf16[256,256], index: 0, kind: input, shape index: {}]   ;;  %s3239_s1 = inlined_call_operand.hbm [shape: bf16[256,128], index: 1, kind: input, shape index: {}]   ;;  %s3240_s2 = inlined_call_operand.hbm [shape: bf16[128,128], index: 2, kind: input, shape index: {}]   ;;  %s3241_s3 = inlined_call_operand.vmem [shape: f32[1,128], index: 3, kind: input, shape index: {}]   ;;  %s3242_s4 = inlined_call_operand.hbm [shape: bf16[128,128], index: 4, kind: input, shape index: {}]   ;;  %s3243_s5 = inlined_call_operand.vmem [shape: f32[1,128], index: 5, kind: input, shape index: {}]   ;;  %s3244_s6 = inlined_call_operand.hbm [shape: f32[256,128], index: 6, kind: output, shape index: {}]  }
   0x1   :  { %3263 = sst [smem:[#allocation24_spill]] %s3239_s1 }
   0x2   :  { %3264 = sst [smem:[#allocation25_spill]] %s3240_s2 }
   0x3   :  { %3265 = sst [smem:[#allocation26_spill]] %s3241_s3 }
   0x4   :  { %3266 = sst [smem:[#allocation27_spill]] %s3243_s5 }
   0x5   :  { %3267 = sst [smem:[#allocation28_spill]] %s3244_s6 }
   0x6   :  { %11 = vsyncpa [#allocation6], 0 }
   0x7   :  { %13 = vsyncpa [#allocation6 + $0x1], 0 }
   0x8   :  { %14 = vsyncpa [#allocation9], 0 }
   0x9   :  { %15 = vsyncpa [#allocation12], 0 }
   0xa   :  { %16 = vsyncpa [#allocation7], 0 }
   0xb   :  { %18 = vsyncpa [#allocation7 + $0x1], 0  ;;  %s2682_s21 = smov 0   ;;  %s2684_s22 = smov 0  }
   0xc   :  { %s2686_s23 = smov 0   ;;  %s2688_s24 = smov 0  }
   0xd   :  { %s2690_s25 = smov 0   ;;  %s2692_s26 = smov 0  }
   0xe   :  { %s2694_s27 = smov 0   ;;  %s2696_s28 = smov 0  }
   0xf   :  { %s2698_s29 = smov 0   ;;  %s2700_s30 = smov 0  }
  0x10   :  { %s2702_s7 = smov 0   ;;  %s2704_s8 = smov 0  }
  0x11   :  { %s2706_s9 = smov 0  }
  0x12 LB: > { %3268 = sst [smem:[#allocation18_spill]] %s2585_s21  ;;  %s1780_s10 = sadd.s32 4294967295, %s2633_s9   ;;  %s2633_s9 = sphi %s2706_s9, %s3330_s9   ;;  %s2629_s8 = sphi %s2704_s8, %s3329_s8   ;;  %s2625_s7 = sphi %s2702_s7, %s3328_s7   ;;  %s2621_s30 = sphi %s2700_s30, %s3327_s30   ;;  %s2617_s29 = sphi %s2698_s29, %s3326_s29   ;;  %s2613_s28 = sphi %s2696_s28, %s3325_s28   ;;  %s2609_s27 = sphi %s2694_s27, %s3324_s27   ;;  %s2605_s26 = sphi %s2692_s26, %s3323_s26   ;;  %s2601_s25 = sphi %s2690_s25, %s3322_s25   ;;  %s2597_s24 = sphi %s2688_s24, %s3321_s24   ;;  %s2593_s23 = sphi %s2686_s23, %s3320_s23   ;;  %s2589_s22 = sphi %s2684_s22, %s3319_s22   ;;  %s2585_s21 = sphi %s2682_s21, %s3318_s21  }
  0x13   : > { %3269 = sst [smem:[#allocation19_spill]] %s2609_s27  ;;  %s1781_s11 = sadd.s32 4294967294, %s2633_s9  }
  0x14   : > { %3270 = sst [smem:[#allocation20_spill]] %s2613_s28  ;;  %p59_p0 = scmp.ne.s32.totalorder %s2605_s26, %s2601_s25 }
  0x15   : > { %3271 = sst [smem:[#allocation21_spill]] %s2633_s9  ;;  %p60_p1 = scmp.eq.s32.totalorder %s2633_s9, 0 }
  0x16   : > { %p65_p2 = scmp.ne.s32.totalorder %s2601_s25, %s2597_s24  ;;  %p2752_p3 = scmp.eq.s32.totalorder %s1780_s10, 0 }
  0x17   : > { %p2757_p4 = por %p60_p1, %p59_p0  ;;  %p193_p5 = scmp.ne.s32.totalorder %s2593_s23, %s2589_s22 }
  0x18   : > { %s3272_s13 = scalar_select %p2752_p3, 1, 0 }
  0x19   : > { %p2765_p6 = por %p2752_p3, %p65_p2  ;;  %p194_p7 = scmp.eq.s32.totalorder %s1780_s10, 15 }
  0x1a   : > { %p199_p8 = scmp.ne.s32.totalorder %s2589_s22, %s2585_s21  ;;  %p200_p9 = scmp.eq.s32.totalorder %s1781_s11, 15 }
  0x1b   : > { %s3274_s16 = scalar_select %p2765_p6, 1, 0 }
  0x1c   : > { %p2771_p10 = por %p194_p7, %p193_p5  ;;  %p1782_p11 = scmp.ge.s32.totalorder %s2633_s9, 1 }
  0x1d   : > { %p2776_p12 = por %p200_p9, %p199_p8  ;;  %p207_p13 = scmp.lt.s32.totalorder %s2633_s9, 17 }
  0x1e   : > { %s3275_s17 = scalar_select %p2771_p10, 1, 0 }
  0x1f   : > { %s3277_s18 = scalar_select %p2776_p12, 1, 0 }
  0x20   : > { %3276 = sst [smem:[#allocation22_spill]] %s3275_s17  ;;  %p2781_p0 = pnand %p1782_p11, %p207_p13 }
  0x21   : > { %3278 = sst [smem:[#allocation23_spill]] %s3277_s18  ;;  %s2635_s20 = smov [#allocation8]  }
  0x22   : > { %s3279_s19 = scalar_select %p2781_p0, 1, 0 }
  0x23   : > { %s219_s24 = sshll.u32 %s2635_s20, 4  ;;  %p2185_p1 = pneg %p2781_p0  ;;  %s2785_s24 = int_to_ptr.vmem [resolvable:$true] %s219_s24 }
  0x24   : > { %p2206_p2 = scmp.lt.s32.totalorder %s2633_s9, 16  ;;  %s2636_s14 = smov [#allocation10]  }
  0x25   : > { %p2792_p5 = pnand %p2185_p1, %p2752_p3  ;;  %s232_s12 = sshll.u32 %s2636_s14, 4  ;;  %s2802_s12 = int_to_ptr.vmem [resolvable:$true] %s232_s12 }
  0x26   : > { %p2798_p7 = pnand %p2206_p2, %p2757_p4  ;;  %s3282_s1 = sld [smem:[#allocation24_spill]] }
  0x27   : > { %p2812_p9 = pneg %p2792_p5 }
  0x28   : > { %s3281_s11 = scalar_select %p2798_p7, 1, 0 }
  0x2c   : > { %s2373_s21 = scalar_lea.hbm %s3282_s1, 2048 }
  0x2d   : > { %p2374_p8 = scmp.ne.s32.totalorder %s3282_s1, %s2373_s21  ;;  %p2380_p13 = scmp.lt.u32.totalorder %s2373_s21, %s3282_s1 }
  0x2f   : > { %p2376_p4 = pnand %p2812_p9, %p2374_p8 }
  0x31   : > { %p2377_p11 = pneg %p2376_p4 }
  0x33   : > { %p2382_p1 = pnand %p2380_p13, %p2377_p11 }
  0x35   : > { %2385 = shalt.err (!%p2382_p1)
}
  0x36   : > { %s2386_s6 = scalar_lea.vmem %s2785_s24, 2048  ;;  %p2394_p3 = scmp.lt.s32.totalorder %s2785_s24, %s2785_s24 }
  0x37   : > { %p2387_p2 = scmp.ne.s32.totalorder %s2785_s24, %s2386_s6  ;;  %p2395_p6 = scmp.lt.s32.totalorder %s2386_s6, %s2386_s6 }
  0x39   : > { %p2389_p12 = pnand %p2387_p2, %p2812_p9  ;;  %p2396_p8 = por %p2395_p6, %p2394_p3 }
  0x3b   : > { %p2390_p10 = pneg %p2389_p12 }
  0x3d   : > { %p2397_p4 = pnand %p2396_p8, %p2390_p10 }
  0x3f   : > { %2400 = shalt.err (!%p2397_p4)
}
  0x40   : > { %s3261_s9 = smov 64   ;;  %s3262_s21 = smov 4  }
  0x41   : > { %2188 = dma.hbm_to_vmem [thread:$0]  (!%p2792_p5), %s3282_s1, 2048, %s2785_s24, [#allocation9], %s3261_s9, %s3261_s9, %s3262_s21  }
  0x42   : > { %s3284_s2 = sld [smem:[#allocation25_spill]] }
  0x48   : > { %s2401_s6 = scalar_lea.hbm %s3284_s2, 1024 }
  0x49   : > { %p2402_p3 = scmp.ne.s32.totalorder %s3284_s2, %s2401_s6  ;;  %p2408_p12 = scmp.lt.u32.totalorder %s2401_s6, %s3284_s2 }
  0x4b   : > { %p2404_p6 = pnand %p2402_p3, %p2812_p9 }
  0x4d   : > { %p2405_p10 = pneg %p2404_p6 }
  0x4f   : > { %p2410_p11 = pnand %p2408_p12, %p2405_p10 }
  0x51   : > { %2413 = shalt.err (!%p2410_p11)
}
  0x52   : > { %s2414_s24 = scalar_lea.vmem %s2802_s12, 1024  ;;  %p2422_p8 = scmp.lt.s32.totalorder %s2802_s12, %s2802_s12 }
  0x53   : > { %p2415_p13 = scmp.ne.s32.totalorder %s2802_s12, %s2414_s24  ;;  %p2423_p4 = scmp.lt.s32.totalorder %s2414_s24, %s2414_s24 }
  0x55   : > { %p2417_p1 = pnand %p2415_p13, %p2812_p9  ;;  %p2424_p3 = por %p2423_p4, %p2422_p8 }
  0x57   : > { %p2418_p2 = pneg %p2417_p1 }
  0x59   : > { %p2425_p6 = pnand %p2424_p3, %p2418_p2 }
  0x5b   : > { %2428 = shalt.err (!%p2425_p6)
}
  0x5c   : > { %2191 = dma.hbm_to_vmem [thread:$0]  (!%p2792_p5), %s3284_s2, 1024, %s2802_s12, [#allocation9], %s3261_s9, %s3261_s9, %s3262_s21  }
  0x5d   : > { %s2639_s27 = smov [#allocation11]   ;;  %s2429_s20 = scalar_lea.hbm %s3242_s4, 1024 }
  0x5e   : > { %s248_s28 = sshll.u32 %s2639_s27, 4  ;;  %p2430_p10 = scmp.ne.s32.totalorder %s3242_s4, %s2429_s20  ;;  %s249_s28 = int_to_ptr.vmem [resolvable:$true] %s248_s28 }
  0x5f   : > { %p2436_p13 = scmp.lt.u32.totalorder %s2429_s20, %s3242_s4 }
  0x60   : > { %p2432_p12 = pnand %p2430_p10, %p2812_p9 }
  0x62   : > { %p2433_p11 = pneg %p2432_p12 }
  0x64   : > { %p2438_p1 = pnand %p2436_p13, %p2433_p11 }
  0x66   : > { %2441 = shalt.err (!%p2438_p1)
}
  0x67   : > { %s2442_s12 = scalar_lea.vmem %s249_s28, 1024  ;;  %p2450_p3 = scmp.lt.s32.totalorder %s249_s28, %s249_s28 }
  0x68   : > { %p2443_p2 = scmp.ne.s32.totalorder %s249_s28, %s2442_s12  ;;  %p2451_p6 = scmp.lt.s32.totalorder %s2442_s12, %s2442_s12 }
  0x6a   : > { %p2445_p8 = pnand %p2443_p2, %p2812_p9  ;;  %p2452_p0 = por %p2451_p6, %p2450_p3 }
  0x6c   : > { %p2446_p4 = pneg %p2445_p8 }
  0x6e   : > { %p2453_p7 = pnand %p2452_p0, %p2446_p4 }
  0x70   : > { %2456 = shalt.err (!%p2453_p7)
}
  0x71   : > { %2194 = dma.hbm_to_vmem [thread:$0]  (!%p2792_p5), %s3242_s4, 1024, %s249_s28, [#allocation12], %s3261_s9, %s3261_s9, %s3262_s21  }
  0x72   : > { %s36_s15 = sadd.s32 1, %s2621_s30  ;;  %s39_s5 = sadd.s32 1, %s2625_s7 }
  0x73   : > { %p37_p0 = scmp.ge.s32.totalorder %s36_s15, 2  ;;  %s43_s10 = sadd.s32 1, %s2629_s8 }
  0x74   : > { %s265_s27 = sand.u32 1, %s2605_s26   ;;  %s1863_s17 = sshll.u32 %s2625_s7, 5 }
  0x75   : > { %s3332_s15 = smov (%p37_p0, %s36_s15), 0  ;;  %s3334_s5 = smov (!%p37_p0, %s39_s5), %s2625_s7 }
  0x76   : > { %s48_s18 = ssub.s32 %s2621_s30, %s3332_s15  ;;  %p41_p7 = scmp.ge.s32.totalorder %s3334_s5, 2 }
  0x77   : > { %s1787_s20 = sshll.u32 %s265_s27, 6  ;;  %s275_s14 = sadd.s32 %s2621_s30, %s1863_s17 }
  0x78   : > { %s3336_s5 = smov (%p41_p7, %s3334_s5), 0  ;;  %s3338_s10 = smov (!%p41_p7, %s43_s10), %s2629_s8 }
  0x79   : > { %s47_s28 = ssub.s32 %s2625_s7, %s3336_s5  ;;  %s1790_s6 = sshll.u32 %s275_s14, 6 }
  0x7a   : > { %p45_p5 = scmp.ge.s32.totalorder %s3338_s10, 4  ;;  %s49_s24 = sor.u32 %s48_s18, %s47_s28 }
  0x7b   : > { %p50_p9 = scmp.eq.s32.totalorder %s49_s24, 0  ;;  %p181_p10 = scmp.eq.s32.totalorder %s47_s28, 0 }
  0x7c   : > { %s3340_s10 = smov (%p45_p5, %s3338_s10), 0  ;;  %s3285_s12 = sadd.s32 1, %s2605_s26 }
  0x7d   : > { %s2904_s1 = scalar_select %p50_p9, %s2605_s26, %s3285_s12  }
  0x7e   : > { %s3286_s3 = sadd.s32 1, %s2593_s23  ;;  %s2914_s2 = scalar_lea.hbm %s3238_s0, %s1790_s6 }
  0x7f   : > { %s2909_s9 = scalar_select %p181_p10, %s2593_s23, %s3286_s3  }
  0x80   : > { %s269_s18 = scalar_lea.vmem [#allocation5], %s1787_s20  ;;  %s2918_s28 = scalar_lea.sflag [#allocation6], %s265_s27 }
  0x81   : > { %s278_s14 = sshll.u32 %s269_s18, 4  ;;  %s2457_s24 = scalar_lea.hbm %s2914_s2, 1024  ;;  %s2916_s14 = int_to_ptr.vmem [resolvable:$true] %s278_s14 }
  0x82   : > { %p2458_p12 = scmp.ne.s32.totalorder %s2914_s2, %s2457_s24  ;;  %p3287_p11 = scmp.ne.s32.totalorder %s3281_s11, 0 }
  0x83   : > { %s2462_s12 = scalar_lea.hbm %s3238_s0, 4096  ;;  %p2463_p8 = scmp.lt.u32.totalorder %s2914_s2, %s3238_s0 }
  0x84   : > { %p2459_p13 = pneg %p3287_p11  ;;  %p2464_p4 = scmp.lt.u32.totalorder %s2462_s12, %s2457_s24 }
  0x85   : > { %p2466_p6 = scmp.lt.u32.totalorder %s2457_s24, %s2914_s2 }
  0x86   : > { %p2460_p1 = pnand %p2459_p13, %p2458_p12  ;;  %p2465_p3 = por %p2464_p4, %p2463_p8 }
  0x88   : > { %p2461_p2 = pneg %p2460_p1  ;;  %p2467_p0 = por %p2466_p6, %p2465_p3 }
  0x8a   : > { %p2468_p7 = pnand %p2467_p0, %p2461_p2 }
  0x8c   : > { %2471 = shalt.err (!%p2468_p7)
}
  0x8d   : > { %s2472_s27 = scalar_lea.vmem %s2916_s14, 1024  ;;  %s2640_s20 = smov [#allocation5]  }
  0x8e   : > { %p2473_p5 = scmp.ne.s32.totalorder %s2916_s14, %s2472_s27  ;;  %s2477_s18 = sshll.u32 %s2640_s20, 4  ;;  %s2478_s18 = int_to_ptr.vmem [resolvable:$false] %s2477_s18 }
  0x8f   : > { %s2479_s21 = scalar_lea.vmem %s2478_s18, 2048  ;;  %p2480_p12 = scmp.lt.s32.totalorder %s2916_s14, %s2478_s18 }
  0x90   : > { %p2475_p9 = pnand %p2473_p5, %p2459_p13  ;;  %p2481_p1 = scmp.lt.s32.totalorder %s2479_s21, %s2472_s27 }
  0x92   : > { %p2476_p10 = pneg %p2475_p9  ;;  %p2482_p8 = por %p2481_p1, %p2480_p12 }
  0x94   : > { %p2483_p4 = pnand %p2482_p8, %p2476_p10 }
  0x96   : > { %2486 = shalt.err (!%p2483_p4)
}
  0x97   : > { %s2641_s24 = smov 128   ;;  %s3288_s6 = smov 4  }
  0x98   : > { %s3289_s12 = smov 64   ;;  %p3290_p13 = scmp.ne.s32.totalorder %s3279_s19, 0 }
  0x99   : > { %2198 = dma.hbm_to_vmem [thread:$0]  (!%p3287_p11), %s2914_s2, 1024, %s2916_s14, %s2918_s28, %s2641_s24, %s3289_s12, %s3288_s6  }
  0x9a   : > { %290 = sbr.rel (%p3290_p13) target bundleno = 1355 (0x54b), region = 44  ;;  %s292_s3 = sand.u32 (!%p3290_p13), 1, %s2601_s25  }
  0x9b   : > { %s1792_s17 = sshll.u32 (!%p3290_p13), %s292_s3, 6  ;;  %s293_s27 = scalar_lea.sflag (!%p3290_p13), [#allocation6], %s292_s3 }
  0x9c   : > { %s2951_s20 = scalar_lea.vmem (!%p3290_p13), [#allocation5], %s1792_s17  ;;  %p3291_p2 = scmp.ne.s32.totalorder (!%p3290_p13), %s3274_s16, 0 }
  0xa1   : > { %2568 = dma.done.wait (%p3291_p2), %s293_s27, 1024  }
  0xa2   : > { %2570 = vsyncadd (%p3291_p2), %s293_s27, 4294966272  ;;  %p3292_p3 = scmp.ne.s32.totalorder %s3272_s13, 0 }
  0xa4   : > { %2572 = dma.done.wait (%p3292_p3), [#allocation9], 3072  }
  0xa5   : > { %2574 = vsyncadd (%p3292_p3), [#allocation9], 4294964224 }
  0xa6   : > { %2576 = dma.done.wait (%p3292_p3), [#allocation12], 1024  }
  0xa7   : > { %2578 = vsyncadd (%p3292_p3), [#allocation12], 4294966272  ;;  %s3293_s2 = sld [smem:[#allocation20_spill]]  ;;  %s3294_s19 = sld [smem:[#allocation19_spill]] }
  0xa8   : > { %s334_s16 = sand.u32 1, %s2589_s22   ;;  %p340_p11 = scmp.eq.s32.totalorder %s2617_s29, 0 }
  0xa9   : > { %s1796_s11 = sshll.u32 %s334_s16, 7 }
  0xaa   : > { %s2975_s13 = scalar_lea.vmem [#allocation13], %s1796_s11 }
  0xad   : > { %p341_p6 = scmp.eq.s32.totalorder %s3293_s2, 0  ;;  %p344_p7 = scmp.eq.s32.totalorder %s3294_s19, 0 }
  0xaf   : > { %p342_p0 = pnand %p341_p6, %p340_p11 }
  0xb1   : > { %p343_p5 = pneg %p342_p0 }
  0xb3   : > { %p345_p9 = pnand %p344_p7, %p343_p5 }
  0xb4   : > { %v2325_v0 = vld [vmem:[#allocation10] sm:$0xff] (!%p345_p9)   ;;  %v2326_v1 = vld [vmem:[#allocation10 + $0x8] sm:$0xff] (!%p345_p9)   ;;  %v2327_v2 = vld [vmem:[#allocation10 + $0x10] sm:$0xff] (!%p345_p9)   ;;  %s3295_s18 = sld [smem:[#allocation26_spill]] (!%p345_p9) }
  0xb5   : > { %348 = sbr.rel (%p345_p9) target bundleno = 457 (0x1c9), region = 64  ;;  %1945 = vmatprep.subr.bf16.mxu0 (!%p345_p9), %v2325_v0  ;;  %2105 = vmatprep.subr.bf16.mxu1 (!%p345_p9), %v2325_v0  ;;  %v2328_v3 = vld [vmem:[#allocation10 + $0x18] sm:$0xff] (!%p345_p9)   ;;  %v2333_v4 = vld [vmem:[#allocation8] sm:$0xff] (!%p345_p9)   ;;  %v2330_v7 = vld [vmem:[#allocation10 + $0x28] sm:$0xff] (!%p345_p9)  }
  0xb6   : > { %1946 = vmatpush3.bf16.msra.mxu0 (!%p345_p9), %v2325_v0  ;;  %2113 = vmatpush3.bf16.msra.mxu1 (!%p345_p9), %v2325_v0  ;;  %v2334_v5 = vld [vmem:[#allocation8 + $0x40] sm:$0xff] (!%p345_p9)   ;;  %v2331_v8 = vld [vmem:[#allocation10 + $0x30] sm:$0xff] (!%p345_p9)   ;;  %v2332_v9 = vld [vmem:[#allocation10 + $0x38] sm:$0xff] (!%p345_p9)  }
  0xb7   : > { %1947 = vmatprep.subr.bf16.mxu0 (!%p345_p9), %v2326_v1  ;;  %2106 = vmatprep.subr.bf16.mxu1 (!%p345_p9), %v2326_v1  ;;  %v2329_v6 = vld [vmem:[#allocation10 + $0x20] sm:$0xff] (!%p345_p9)   ;;  %v2335_v10 = vld [vmem:[#allocation8 + $0x8] sm:$0xff] (!%p345_p9)   ;;  %v2337_v12 = vld [vmem:[#allocation8 + $0x10] sm:$0xff] (!%p345_p9)  }
  0xb8   : > { %1961 = vmatprep.mubr.bf16.mxu0 (!%p345_p9), %v2333_v4  ;;  %1977 = vmatprep.mubr.bf16.mxu1 (!%p345_p9), %v2334_v5  ;;  %v2336_v11 = vld [vmem:[#allocation8 + $0x48] sm:$0xff] (!%p345_p9)   ;;  %v2338_v13 = vld [vmem:[#allocation8 + $0x50] sm:$0xff] (!%p345_p9)   ;;  %v2339_v14 = vld [vmem:[#allocation8 + $0x18] sm:$0xff] (!%p345_p9)  }
  0xb9   : > { %v2340_v15 = vld [vmem:[#allocation8 + $0x58] sm:$0xff] (!%p345_p9)   ;;  %v2341_v16 = vld [vmem:[#allocation8 + $0x20] sm:$0xff] (!%p345_p9)   ;;  %v2343_v18 = vld [vmem:[#allocation8 + $0x28] sm:$0xff] (!%p345_p9)  }
  0xba   : > { %1948 = vmatpush3.bf16.msra.mxu0 (!%p345_p9), %v2326_v1  ;;  %2114 = vmatpush3.bf16.msra.mxu1 (!%p345_p9), %v2326_v1  ;;  %v2342_v17 = vld [vmem:[#allocation8 + $0x60] sm:$0xff] (!%p345_p9)   ;;  %v2344_v19 = vld [vmem:[#allocation8 + $0x68] sm:$0xff] (!%p345_p9)   ;;  %v2345_v20 = vld [vmem:[#allocation8 + $0x30] sm:$0xff] (!%p345_p9)  }
  0xbb   : > { %1949 = vmatprep.subr.bf16.mxu0 (!%p345_p9), %v2327_v2  ;;  %2107 = vmatprep.subr.bf16.mxu1 (!%p345_p9), %v2327_v2  ;;  %v2346_v21 = vld [vmem:[#allocation8 + $0x70] sm:$0xff] (!%p345_p9)   ;;  %v2347_v22 = vld [vmem:[#allocation8 + $0x38] sm:$0xff] (!%p345_p9)   ;;  %v2980_v25 = vld [vmem:[%s3295_s18] ss:$0 sm:$0xff] (!%p345_p9) }
  0xbc   : > { %v2348_v23 = vld [vmem:[#allocation8 + $0x78] sm:$0xff]  }
  0xbe   : > { %1950 = vmatpush3.bf16.msra.mxu0 %v2327_v2  ;;  %2115 = vmatpush3.bf16.msra.mxu1 %v2327_v2 }
  0xbf   : > { %1951 = vmatprep.subr.bf16.mxu0 %v2328_v3  ;;  %2108 = vmatprep.subr.bf16.mxu1 %v2328_v3 }
  0xc2   : > { %1952 = vmatpush3.bf16.msra.mxu0 %v2328_v3  ;;  %2116 = vmatpush3.bf16.msra.mxu1 %v2328_v3 }
  0xc3   : > { %1953 = vmatprep.subr.bf16.mxu0 %v2329_v6  ;;  %2109 = vmatprep.subr.bf16.mxu1 %v2329_v6 }
  0xc6   : > { %1954 = vmatpush3.bf16.msra.mxu0 %v2329_v6  ;;  %2117 = vmatpush3.bf16.msra.mxu1 %v2329_v6 }
  0xc7   : > { %1955 = vmatprep.subr.bf16.mxu0 %v2330_v7  ;;  %2110 = vmatprep.subr.bf16.mxu1 %v2330_v7 }
  0xca   : > { %1956 = vmatpush3.bf16.msra.mxu0 %v2330_v7  ;;  %2118 = vmatpush3.bf16.msra.mxu1 %v2330_v7 }
  0xcb   : > { %1957 = vmatprep.subr.bf16.mxu0 %v2331_v8  ;;  %2111 = vmatprep.subr.bf16.mxu1 %v2331_v8 }
  0xce   : > { %1958 = vmatpush3.bf16.msra.mxu0 %v2331_v8  ;;  %2119 = vmatpush3.bf16.msra.mxu1 %v2331_v8 }
  0xcf   : > { %1959 = vmatprep.subr.bf16.mxu0 %v2332_v9  ;;  %2112 = vmatprep.subr.bf16.mxu1 %v2332_v9 }
  0xd2   : > { %1960 = vmatpush3.bf16.msra.mxu0 %v2332_v9  ;;  %2120 = vmatpush3.bf16.msra.mxu1 %v2332_v9 }
  0xd5   : > { %1962 = vmatmul.mubr.bf16.vlgmr.msra.gmra.mrb[0].mxu0 %v2335_v10  ;;  %1978 = vmatmul.mubr.bf16.vlgmr.msra.gmra.mrb[0].mxu1 %v2336_v11 }
  0xd6   : > { %1965 = vmatprep.mubr.bf16.mxu0 %v2337_v12  ;;  %1981 = vmatprep.mubr.bf16.mxu1 %v2338_v13 }
  0xdd   : > { %1966 = vmatmul.mubr.bf16.gmra.mrb[4].mxu0 %v2339_v14  ;;  %1982 = vmatmul.mubr.bf16.gmra.mrb[4].mxu1 %v2340_v15 }
  0xde   : > { %1969 = vmatprep.mubr.bf16.mxu0 %v2341_v16  ;;  %1985 = vmatprep.mubr.bf16.mxu1 %v2342_v17 }
  0xe5   : > { %1970 = vmatmul.mubr.bf16.gmra.mrb[8].mxu0 %v2343_v18  ;;  %1986 = vmatmul.mubr.bf16.gmra.mrb[8].mxu1 %v2344_v19 }
  0xe6   : > { %1973 = vmatprep.mubr.bf16.mxu0 %v2345_v20  ;;  %1989 = vmatprep.mubr.bf16.mxu1 %v2346_v21 }
  0xed   : > { %1974 = vmatmul.mubr.bf16.gmra.mrb[12].mxu0 %v2347_v22  ;;  %1990 = vmatmul.mubr.bf16.gmra.mrb[12].mxu1 %v2348_v23 }
 0x1a8   : > { %v1963_v24 = vpop.f32.mrb[0].mxu0  ;;  %v1979_v26 = vpop.f32.mrb[0].mxu1 }
 0x1a9   : > { %v582_v27 = vpop.f32.mrb[1].mxu0  ;;  %v646_v28 = vpop.f32.mrb[1].mxu1  ;;  %v591_v31 = vadd.f32 %v1963_v24, %v2980_v25  ;;  %v655_v32 = vadd.f32 %v1979_v26, %v2980_v25 }
 0x1aa   : > { %v1964_v29 = vpop.f32.mrb[2].mxu0  ;;  %v1980_v30 = vpop.f32.mrb[2].mxu1  ;;  %v583_v37 = vadd.f32 %v2980_v25, %v582_v27  ;;  %v647_v38 = vadd.f32 %v2980_v25, %v646_v28 }
 0x1ab   : > { %v594_v33 = vadd.f32 %v1964_v29, %v2980_v25  ;;  %v658_v34 = vadd.f32 %v1980_v30, %v2980_v25  ;;  %v585_v35 = vpop.f32.mrb[3].mxu0  ;;  %v649_v36 = vpop.f32.mrb[3].mxu1 }
 0x1ac   : > { %v586_v39 = vadd.f32 %v2980_v25, %v585_v35  ;;  %v650_v40 = vadd.f32 %v2980_v25, %v649_v36 }
 0x1ad   : > { %v710_v41 = vpack.c.bf16 %v594_v33, %v591_v31  ;;  %v718_v42 = vpack.c.bf16 %v658_v34, %v655_v32 }
 0x1ae   : > { %v709_v43 = vpack.c.bf16 %v586_v39, %v583_v37  ;;  %v717_v44 = vpack.c.bf16 %v650_v40, %v647_v38 }
 0x1af   : > { %726 = vst [vmem:[#allocation2 + $0x8] sm:$0xff] %v710_v41  ;;  %734 = vst [vmem:[#allocation2 + $0x48] sm:$0xff] %v718_v42 }
 0x1b0   : > { %725 = vst [vmem:[#allocation2] sm:$0xff] %v709_v43  ;;  %733 = vst [vmem:[#allocation2 + $0x40] sm:$0xff] %v717_v44  ;;  %v1967_v45 = vpop.f32.mrb[4].mxu0  ;;  %v1983_v46 = vpop.f32.mrb[4].mxu1 }
 0x1b1   : > { %v598_v47 = vpop.f32.mrb[5].mxu0  ;;  %v662_v48 = vpop.f32.mrb[5].mxu1  ;;  %v607_v51 = vadd.f32 %v1967_v45, %v2980_v25  ;;  %v671_v52 = vadd.f32 %v1983_v46, %v2980_v25 }
 0x1b2   : > { %v1968_v49 = vpop.f32.mrb[6].mxu0  ;;  %v1984_v50 = vpop.f32.mrb[6].mxu1  ;;  %v599_v57 = vadd.f32 %v2980_v25, %v598_v47  ;;  %v663_v58 = vadd.f32 %v2980_v25, %v662_v48 }
 0x1b3   : > { %v610_v53 = vadd.f32 %v1968_v49, %v2980_v25  ;;  %v674_v54 = vadd.f32 %v1984_v50, %v2980_v25  ;;  %v601_v55 = vpop.f32.mrb[7].mxu0  ;;  %v665_v56 = vpop.f32.mrb[7].mxu1 }
 0x1b4   : > { %v602_v59 = vadd.f32 %v2980_v25, %v601_v55  ;;  %v666_v60 = vadd.f32 %v2980_v25, %v665_v56 }
 0x1b5   : > { %v712_v61 = vpack.c.bf16 %v610_v53, %v607_v51  ;;  %v720_v62 = vpack.c.bf16 %v674_v54, %v671_v52 }
 0x1b6   : > { %v711_v63 = vpack.c.bf16 %v602_v59, %v599_v57  ;;  %v719_v0 = vpack.c.bf16 %v666_v60, %v663_v58 }
 0x1b7   : > { %728 = vst [vmem:[#allocation2 + $0x18] sm:$0xff] %v712_v61  ;;  %736 = vst [vmem:[#allocation2 + $0x58] sm:$0xff] %v720_v62 }
 0x1b8   : > { %727 = vst [vmem:[#allocation2 + $0x10] sm:$0xff] %v711_v63  ;;  %735 = vst [vmem:[#allocation2 + $0x50] sm:$0xff] %v719_v0  ;;  %v1971_v1 = vpop.f32.mrb[8].mxu0  ;;  %v1987_v2 = vpop.f32.mrb[8].mxu1 }
 0x1b9   : > { %v614_v3 = vpop.f32.mrb[9].mxu0  ;;  %v678_v4 = vpop.f32.mrb[9].mxu1  ;;  %v623_v7 = vadd.f32 %v1971_v1, %v2980_v25  ;;  %v687_v8 = vadd.f32 %v1987_v2, %v2980_v25 }
 0x1ba   : > { %v1972_v5 = vpop.f32.mrb[10].mxu0  ;;  %v1988_v6 = vpop.f32.mrb[10].mxu1  ;;  %v615_v13 = vadd.f32 %v2980_v25, %v614_v3  ;;  %v679_v14 = vadd.f32 %v2980_v25, %v678_v4 }
 0x1bb   : > { %v626_v9 = vadd.f32 %v1972_v5, %v2980_v25  ;;  %v690_v10 = vadd.f32 %v1988_v6, %v2980_v25  ;;  %v617_v11 = vpop.f32.mrb[11].mxu0  ;;  %v681_v12 = vpop.f32.mrb[11].mxu1 }
 0x1bc   : > { %v618_v15 = vadd.f32 %v2980_v25, %v617_v11  ;;  %v682_v16 = vadd.f32 %v2980_v25, %v681_v12 }
 0x1bd   : > { %v714_v17 = vpack.c.bf16 %v626_v9, %v623_v7  ;;  %v722_v18 = vpack.c.bf16 %v690_v10, %v687_v8 }
 0x1be   : > { %v713_v19 = vpack.c.bf16 %v618_v15, %v615_v13  ;;  %v721_v20 = vpack.c.bf16 %v682_v16, %v679_v14 }
 0x1bf   : > { %730 = vst [vmem:[#allocation2 + $0x28] sm:$0xff] %v714_v17  ;;  %738 = vst [vmem:[#allocation2 + $0x68] sm:$0xff] %v722_v18 }
 0x1c0   : > { %729 = vst [vmem:[#allocation2 + $0x20] sm:$0xff] %v713_v19  ;;  %737 = vst [vmem:[#allocation2 + $0x60] sm:$0xff] %v721_v20  ;;  %v1975_v21 = vpop.f32.mrb[12].mxu0  ;;  %v1991_v22 = vpop.f32.mrb[12].mxu1 }
 0x1c1   : > { %v630_v23 = vpop.f32.mrb[13].mxu0  ;;  %v694_v24 = vpop.f32.mrb[13].mxu1  ;;  %v639_v28 = vadd.f32 %v1975_v21, %v2980_v25  ;;  %v703_v29 = vadd.f32 %v1991_v22, %v2980_v25 }
 0x1c2   : > { %v1976_v26 = vpop.f32.mrb[14].mxu0  ;;  %v1992_v27 = vpop.f32.mrb[14].mxu1  ;;  %v631_v34 = vadd.f32 %v2980_v25, %v630_v23  ;;  %v695_v35 = vadd.f32 %v2980_v25, %v694_v24 }
 0x1c3   : > { %v642_v30 = vadd.f32 %v1976_v26, %v2980_v25  ;;  %v706_v31 = vadd.f32 %v1992_v27, %v2980_v25  ;;  %v633_v32 = vpop.f32.mrb[15].mxu0  ;;  %v697_v33 = vpop.f32.mrb[15].mxu1 }
 0x1c4   : > { %v634_v36 = vadd.f32 %v2980_v25, %v633_v32  ;;  %v698_v37 = vadd.f32 %v2980_v25, %v697_v33 }
 0x1c5   : > { %v716_v38 = vpack.c.bf16 %v642_v30, %v639_v28  ;;  %v724_v39 = vpack.c.bf16 %v706_v31, %v703_v29 }
 0x1c6   : > { %v715_v40 = vpack.c.bf16 %v634_v36, %v631_v34  ;;  %v723_v41 = vpack.c.bf16 %v698_v37, %v695_v35 }
 0x1c7   : > { %732 = vst [vmem:[#allocation2 + $0x38] sm:$0xff] %v716_v38  ;;  %740 = vst [vmem:[#allocation2 + $0x78] sm:$0xff] %v724_v39 }
 0x1c8   : > { %731 = vst [vmem:[#allocation2 + $0x30] sm:$0xff] %v715_v40  ;;  %739 = vst [vmem:[#allocation2 + $0x70] sm:$0xff] %v723_v41 }
 0x1c9 PF: > { %p741_p10 = scmp.eq.s32.totalorder %s2617_s29, 2 }
 0x1cb   : > { %p742_p12 = pnand %p741_p10, %p341_p6 }
 0x1cd   : > { %p743_p1 = pneg %p742_p12 }
 0x1cf   : > { %p744_p8 = pnand %p743_p1, %p344_p7 }
 0x1d0   : > { %v2349_v25 = vld [vmem:[#allocation11] sm:$0xff] (!%p744_p8)   ;;  %v2350_v42 = vld [vmem:[#allocation11 + $0x8] sm:$0xff] (!%p744_p8)   ;;  %v2351_v43 = vld [vmem:[#allocation11 + $0x10] sm:$0xff] (!%p744_p8)   ;;  %v2642_v47 = vmov (!%p744_p8), 0   ;;  %s3298_s3 = sld [smem:[#allocation27_spill]] (!%p744_p8) }
 0x1d1   : > { %747 = sbr.rel (%p744_p8) target bundleno = 741 (0x2e5), region = 68  ;;  %1993 = vmatprep.subr.bf16.mxu0 (!%p744_p8), %v2349_v25  ;;  %2121 = vmatprep.subr.bf16.mxu1 (!%p744_p8), %v2349_v25  ;;  %v2352_v44 = vld [vmem:[#allocation11 + $0x18] sm:$0xff] (!%p744_p8)   ;;  %v748_v45 = vld [vmem:[#allocation2] sm:$0xff] (!%p744_p8)  ;;  %v2354_v51 = vld [vmem:[#allocation11 + $0x28] sm:$0xff] (!%p744_p8)  }
 0x1d2   : > { %1994 = vmatpush3.bf16.msra.mxu0 (!%p744_p8), %v2349_v25  ;;  %2129 = vmatpush3.bf16.msra.mxu1 (!%p744_p8), %v2349_v25  ;;  %v756_v46 = vld [vmem:[#allocation2 + $0x40] sm:$0xff] (!%p744_p8)  ;;  %v764_v48 = vmax.bf16 (!%p744_p8), %v2642_v47, %v748_v45  ;;  %v2355_v52 = vld [vmem:[#allocation11 + $0x30] sm:$0xff] (!%p744_p8)   ;;  %v2356_v53 = vld [vmem:[#allocation11 + $0x38] sm:$0xff] (!%p744_p8)  }
 0x1d3   : > { %1995 = vmatprep.subr.bf16.mxu0 (!%p744_p8), %v2350_v42  ;;  %2122 = vmatprep.subr.bf16.mxu1 (!%p744_p8), %v2350_v42  ;;  %v772_v49 = vmax.bf16 (!%p744_p8), %v2642_v47, %v756_v46  ;;  %v2353_v50 = vld [vmem:[#allocation11 + $0x20] sm:$0xff] (!%p744_p8)   ;;  %v749_v54 = vld [vmem:[#allocation2 + $0x8] sm:$0xff] (!%p744_p8)  ;;  %v750_v56 = vld [vmem:[#allocation2 + $0x10] sm:$0xff] (!%p744_p8) }
 0x1d4   : > { %2009 = vmatprep.mubr.bf16.mxu0 (!%p744_p8), %v764_v48  ;;  %v757_v55 = vld [vmem:[#allocation2 + $0x48] sm:$0xff] (!%p744_p8)  ;;  %v758_v57 = vld [vmem:[#allocation2 + $0x50] sm:$0xff] (!%p744_p8)  ;;  %v765_v58 = vmax.bf16 (!%p744_p8), %v2642_v47, %v749_v54  ;;  %v766_v60 = vmax.bf16 (!%p744_p8), %v2642_v47, %v750_v56  ;;  %v751_v62 = vld [vmem:[#allocation2 + $0x18] sm:$0xff] (!%p744_p8) }
 0x1d5   : > { %2025 = vmatprep.mubr.bf16.mxu1 (!%p744_p8), %v772_v49  ;;  %v773_v59 = vmax.bf16 (!%p744_p8), %v2642_v47, %v757_v55  ;;  %v774_v61 = vmax.bf16 (!%p744_p8), %v2642_v47, %v758_v57  ;;  %v759_v63 = vld [vmem:[#allocation2 + $0x58] sm:$0xff] (!%p744_p8)  ;;  %v752_v0 = vld [vmem:[#allocation2 + $0x20] sm:$0xff] (!%p744_p8)  ;;  %v767_v2 = vmax.bf16 (!%p744_p8), %v2642_v47, %v751_v62  ;;  %v753_v6 = vld [vmem:[#allocation2 + $0x28] sm:$0xff] (!%p744_p8) }
 0x1d6   : > { %1996 = vmatpush3.bf16.msra.mxu0 (!%p744_p8), %v2350_v42  ;;  %2130 = vmatpush3.bf16.msra.mxu1 (!%p744_p8), %v2350_v42  ;;  %v760_v1 = vld [vmem:[#allocation2 + $0x60] sm:$0xff] (!%p744_p8)  ;;  %v775_v3 = vmax.bf16 (!%p744_p8), %v2642_v47, %v759_v63  ;;  %v768_v4 = vmax.bf16 (!%p744_p8), %v2642_v47, %v752_v0  ;;  %v761_v7 = vld [vmem:[#allocation2 + $0x68] sm:$0xff] (!%p744_p8)  ;;  %v754_v8 = vld [vmem:[#allocation2 + $0x30] sm:$0xff] (!%p744_p8)  ;;  %v769_v10 = vmax.bf16 (!%p744_p8), %v2642_v47, %v753_v6 }
 0x1d7   : > { %1997 = vmatprep.subr.bf16.mxu0 (!%p744_p8), %v2351_v43  ;;  %2123 = vmatprep.subr.bf16.mxu1 (!%p744_p8), %v2351_v43  ;;  %v776_v5 = vmax.bf16 (!%p744_p8), %v2642_v47, %v760_v1  ;;  %v762_v9 = vld [vmem:[#allocation2 + $0x70] sm:$0xff] (!%p744_p8)  ;;  %v777_v11 = vmax.bf16 (!%p744_p8), %v2642_v47, %v761_v7  ;;  %v770_v12 = vmax.bf16 (!%p744_p8), %v2642_v47, %v754_v8  ;;  %v755_v14 = vld [vmem:[#allocation2 + $0x38] sm:$0xff] (!%p744_p8)  ;;  %v3038_v19 = vld [vmem:[%s3298_s3] ss:$0 sm:$0xff] (!%p744_p8) }
 0x1d8   : > { %v778_v13 = vmax.bf16 %v2642_v47, %v762_v9  ;;  %v763_v15 = vld [vmem:[#allocation2 + $0x78] sm:$0xff]  ;;  %v771_v16 = vmax.bf16 %v2642_v47, %v755_v14 }
 0x1d9   : > { %v779_v17 = vmax.bf16 %v2642_v47, %v763_v15 }
 0x1da   : > { %1998 = vmatpush3.bf16.msra.mxu0 %v2351_v43  ;;  %2131 = vmatpush3.bf16.msra.mxu1 %v2351_v43 }
 0x1db   : > { %1999 = vmatprep.subr.bf16.mxu0 %v2352_v44  ;;  %2124 = vmatprep.subr.bf16.mxu1 %v2352_v44 }
 0x1de   : > { %2000 = vmatpush3.bf16.msra.mxu0 %v2352_v44  ;;  %2132 = vmatpush3.bf16.msra.mxu1 %v2352_v44 }
 0x1df   : > { %2001 = vmatprep.subr.bf16.mxu0 %v2353_v50  ;;  %2125 = vmatprep.subr.bf16.mxu1 %v2353_v50 }
 0x1e2   : > { %2002 = vmatpush3.bf16.msra.mxu0 %v2353_v50  ;;  %2133 = vmatpush3.bf16.msra.mxu1 %v2353_v50 }
 0x1e3   : > { %2003 = vmatprep.subr.bf16.mxu0 %v2354_v51  ;;  %2126 = vmatprep.subr.bf16.mxu1 %v2354_v51 }
 0x1e6   : > { %2004 = vmatpush3.bf16.msra.mxu0 %v2354_v51  ;;  %2134 = vmatpush3.bf16.msra.mxu1 %v2354_v51 }
 0x1e7   : > { %2005 = vmatprep.subr.bf16.mxu0 %v2355_v52  ;;  %2127 = vmatprep.subr.bf16.mxu1 %v2355_v52 }
 0x1ea   : > { %2006 = vmatpush3.bf16.msra.mxu0 %v2355_v52  ;;  %2135 = vmatpush3.bf16.msra.mxu1 %v2355_v52 }
 0x1eb   : > { %2007 = vmatprep.subr.bf16.mxu0 %v2356_v53  ;;  %2128 = vmatprep.subr.bf16.mxu1 %v2356_v53 }
 0x1ee   : > { %2008 = vmatpush3.bf16.msra.mxu0 %v2356_v53  ;;  %2136 = vmatpush3.bf16.msra.mxu1 %v2356_v53 }
 0x1f1   : > { %2010 = vmatmul.mubr.bf16.vlgmr.msra.gmra.mrb[0].mxu0 %v765_v58  ;;  %2026 = vmatmul.mubr.bf16.vlgmr.msra.gmra.mrb[0].mxu1 %v773_v59 }
 0x1f2   : > { %2013 = vmatprep.mubr.bf16.mxu0 %v766_v60  ;;  %2029 = vmatprep.mubr.bf16.mxu1 %v774_v61 }
 0x1f9   : > { %2014 = vmatmul.mubr.bf16.gmra.mrb[4].mxu0 %v767_v2  ;;  %2030 = vmatmul.mubr.bf16.gmra.mrb[4].mxu1 %v775_v3 }
 0x1fa   : > { %2017 = vmatprep.mubr.bf16.mxu0 %v768_v4  ;;  %2033 = vmatprep.mubr.bf16.mxu1 %v776_v5 }
 0x201   : > { %2018 = vmatmul.mubr.bf16.gmra.mrb[8].mxu0 %v769_v10  ;;  %2034 = vmatmul.mubr.bf16.gmra.mrb[8].mxu1 %v777_v11 }
 0x202   : > { %2021 = vmatprep.mubr.bf16.mxu0 %v770_v12  ;;  %2037 = vmatprep.mubr.bf16.mxu1 %v778_v13 }
 0x209   : > { %2022 = vmatmul.mubr.bf16.gmra.mrb[12].mxu0 %v771_v16  ;;  %2038 = vmatmul.mubr.bf16.gmra.mrb[12].mxu1 %v779_v17 }
 0x2c4   : > { %v2011_v18 = vpop.f32.mrb[0].mxu0  ;;  %v2027_v20 = vpop.f32.mrb[0].mxu1 }
 0x2c5   : > { %v885_v21 = vpop.f32.mrb[1].mxu0  ;;  %v949_v22 = vpop.f32.mrb[1].mxu1  ;;  %v894_v26 = vadd.f32 %v2011_v18, %v3038_v19  ;;  %v958_v27 = vadd.f32 %v2027_v20, %v3038_v19 }
 0x2c6   : > { %v2012_v23 = vpop.f32.mrb[2].mxu0  ;;  %v2028_v24 = vpop.f32.mrb[2].mxu1  ;;  %v886_v32 = vadd.f32 %v3038_v19, %v885_v21  ;;  %v950_v33 = vadd.f32 %v3038_v19, %v949_v22 }
 0x2c7   : > { %v897_v28 = vadd.f32 %v2012_v23, %v3038_v19  ;;  %v961_v29 = vadd.f32 %v2028_v24, %v3038_v19  ;;  %v888_v30 = vpop.f32.mrb[3].mxu0  ;;  %v952_v31 = vpop.f32.mrb[3].mxu1 }
 0x2c8   : > { %v889_v34 = vadd.f32 %v3038_v19, %v888_v30  ;;  %v953_v35 = vadd.f32 %v3038_v19, %v952_v31 }
 0x2c9   : > { %v1013_v36 = vpack.c.bf16 %v897_v28, %v894_v26  ;;  %v1021_v37 = vpack.c.bf16 %v961_v29, %v958_v27 }
 0x2ca   : > { %v1012_v38 = vpack.c.bf16 %v889_v34, %v886_v32  ;;  %v1020_v39 = vpack.c.bf16 %v953_v35, %v950_v33 }
 0x2cb   : > { %1029 = vst [vmem:[#allocation2 + $0x8] sm:$0xff] %v1013_v36  ;;  %1037 = vst [vmem:[#allocation2 + $0x48] sm:$0xff] %v1021_v37 }
 0x2cc   : > { %1028 = vst [vmem:[#allocation2] sm:$0xff] %v1012_v38  ;;  %1036 = vst [vmem:[#allocation2 + $0x40] sm:$0xff] %v1020_v39  ;;  %v2015_v40 = vpop.f32.mrb[4].mxu0  ;;  %v2031_v41 = vpop.f32.mrb[4].mxu1 }
 0x2cd   : > { %v901_v25 = vpop.f32.mrb[5].mxu0  ;;  %v965_v42 = vpop.f32.mrb[5].mxu1  ;;  %v910_v45 = vadd.f32 %v2015_v40, %v3038_v19  ;;  %v974_v46 = vadd.f32 %v2031_v41, %v3038_v19 }
 0x2ce   : > { %v2016_v43 = vpop.f32.mrb[6].mxu0  ;;  %v2032_v44 = vpop.f32.mrb[6].mxu1  ;;  %v902_v51 = vadd.f32 %v3038_v19, %v901_v25  ;;  %v966_v52 = vadd.f32 %v3038_v19, %v965_v42 }
 0x2cf   : > { %v913_v47 = vadd.f32 %v2016_v43, %v3038_v19  ;;  %v977_v48 = vadd.f32 %v2032_v44, %v3038_v19  ;;  %v904_v49 = vpop.f32.mrb[7].mxu0  ;;  %v968_v50 = vpop.f32.mrb[7].mxu1 }
 0x2d0   : > { %v905_v53 = vadd.f32 %v3038_v19, %v904_v49  ;;  %v969_v54 = vadd.f32 %v3038_v19, %v968_v50 }
 0x2d1   : > { %v1015_v55 = vpack.c.bf16 %v913_v47, %v910_v45  ;;  %v1023_v56 = vpack.c.bf16 %v977_v48, %v974_v46 }
 0x2d2   : > { %v1014_v57 = vpack.c.bf16 %v905_v53, %v902_v51  ;;  %v1022_v58 = vpack.c.bf16 %v969_v54, %v966_v52 }
 0x2d3   : > { %1031 = vst [vmem:[#allocation2 + $0x18] sm:$0xff] %v1015_v55  ;;  %1039 = vst [vmem:[#allocation2 + $0x58] sm:$0xff] %v1023_v56 }
 0x2d4   : > { %1030 = vst [vmem:[#allocation2 + $0x10] sm:$0xff] %v1014_v57  ;;  %1038 = vst [vmem:[#allocation2 + $0x50] sm:$0xff] %v1022_v58  ;;  %v2019_v59 = vpop.f32.mrb[8].mxu0  ;;  %v2035_v60 = vpop.f32.mrb[8].mxu1 }
 0x2d5   : > { %v917_v61 = vpop.f32.mrb[9].mxu0  ;;  %v981_v62 = vpop.f32.mrb[9].mxu1  ;;  %v926_v1 = vadd.f32 %v2019_v59, %v3038_v19  ;;  %v990_v2 = vadd.f32 %v2035_v60, %v3038_v19 }
 0x2d6   : > { %v2020_v63 = vpop.f32.mrb[10].mxu0  ;;  %v2036_v0 = vpop.f32.mrb[10].mxu1  ;;  %v918_v7 = vadd.f32 %v3038_v19, %v917_v61  ;;  %v982_v8 = vadd.f32 %v3038_v19, %v981_v62 }
 0x2d7   : > { %v929_v3 = vadd.f32 %v2020_v63, %v3038_v19  ;;  %v993_v4 = vadd.f32 %v2036_v0, %v3038_v19  ;;  %v920_v5 = vpop.f32.mrb[11].mxu0  ;;  %v984_v6 = vpop.f32.mrb[11].mxu1 }
 0x2d8   : > { %v921_v9 = vadd.f32 %v3038_v19, %v920_v5  ;;  %v985_v10 = vadd.f32 %v3038_v19, %v984_v6 }
 0x2d9   : > { %v1017_v11 = vpack.c.bf16 %v929_v3, %v926_v1  ;;  %v1025_v12 = vpack.c.bf16 %v993_v4, %v990_v2 }
 0x2da   : > { %v1016_v13 = vpack.c.bf16 %v921_v9, %v918_v7  ;;  %v1024_v14 = vpack.c.bf16 %v985_v10, %v982_v8 }
 0x2db   : > { %1033 = vst [vmem:[#allocation2 + $0x28] sm:$0xff] %v1017_v11  ;;  %1041 = vst [vmem:[#allocation2 + $0x68] sm:$0xff] %v1025_v12 }
 0x2dc   : > { %1032 = vst [vmem:[#allocation2 + $0x20] sm:$0xff] %v1016_v13  ;;  %1040 = vst [vmem:[#allocation2 + $0x60] sm:$0xff] %v1024_v14  ;;  %v2023_v15 = vpop.f32.mrb[12].mxu0  ;;  %v2039_v16 = vpop.f32.mrb[12].mxu1 }
 0x2dd   : > { %v933_v17 = vpop.f32.mrb[13].mxu0  ;;  %v997_v18 = vpop.f32.mrb[13].mxu1  ;;  %v942_v22 = vadd.f32 %v2023_v15, %v3038_v19  ;;  %v1006_v23 = vadd.f32 %v2039_v16, %v3038_v19 }
 0x2de   : > { %v2024_v20 = vpop.f32.mrb[14].mxu0  ;;  %v2040_v21 = vpop.f32.mrb[14].mxu1  ;;  %v934_v29 = vadd.f32 %v3038_v19, %v933_v17  ;;  %v998_v30 = vadd.f32 %v3038_v19, %v997_v18 }
 0x2df   : > { %v945_v24 = vadd.f32 %v2024_v20, %v3038_v19  ;;  %v1009_v26 = vadd.f32 %v2040_v21, %v3038_v19  ;;  %v936_v27 = vpop.f32.mrb[15].mxu0  ;;  %v1000_v28 = vpop.f32.mrb[15].mxu1 }
 0x2e0   : > { %v937_v31 = vadd.f32 %v3038_v19, %v936_v27  ;;  %v1001_v32 = vadd.f32 %v3038_v19, %v1000_v28 }
 0x2e1   : > { %v1019_v33 = vpack.c.bf16 %v945_v24, %v942_v22  ;;  %v1027_v34 = vpack.c.bf16 %v1009_v26, %v1006_v23 }
 0x2e2   : > { %v1018_v35 = vpack.c.bf16 %v937_v31, %v934_v29  ;;  %v1026_v36 = vpack.c.bf16 %v1001_v32, %v998_v30 }
 0x2e3   : > { %1035 = vst [vmem:[#allocation2 + $0x38] sm:$0xff] %v1019_v33  ;;  %1043 = vst [vmem:[#allocation2 + $0x78] sm:$0xff] %v1027_v34 }
 0x2e4   : > { %1034 = vst [vmem:[#allocation2 + $0x30] sm:$0xff] %v1018_v35  ;;  %1042 = vst [vmem:[#allocation2 + $0x70] sm:$0xff] %v1026_v36 }
 0x2e5 PF: > { %s3299_s17 = sld [smem:[#allocation19_spill]] }
 0x2eb   : > { %p1831_p4 = scmp.ne.s32.totalorder %s3299_s17, 0 }
 0x2ec   : > { %v2643_v37 = vmov (!%p1831_p4), 0.0  }
 0x2ed   : > { %1046 = sbr.rel (%p1831_p4) target bundleno = 757 (0x2f5), region = 72  ;;  %1047 = vst [vmem:[#allocation4] sm:$0xff] (!%p1831_p4), %v2643_v37  ;;  %1048 = vst [vmem:[#allocation4 + $0x8] sm:$0xff] (!%p1831_p4), %v2643_v37 }
 0x2ee   : > { %1049 = vst [vmem:[#allocation4 + $0x10] sm:$0xff] (!%p1831_p4), %v2643_v37  ;;  %1050 = vst [vmem:[#allocation4 + $0x18] sm:$0xff] (!%p1831_p4), %v2643_v37 }
 0x2ef   : > { %1051 = vst [vmem:[#allocation4 + $0x20] sm:$0xff] (!%p1831_p4), %v2643_v37  ;;  %1052 = vst [vmem:[#allocation4 + $0x28] sm:$0xff] (!%p1831_p4), %v2643_v37 }
 0x2f0   : > { %1053 = vst [vmem:[#allocation4 + $0x30] sm:$0xff] (!%p1831_p4), %v2643_v37  ;;  %1054 = vst [vmem:[#allocation4 + $0x38] sm:$0xff] (!%p1831_p4), %v2643_v37 }
 0x2f1   : > { %1055 = vst [vmem:[#allocation4 + $0x40] sm:$0xff] (!%p1831_p4), %v2643_v37  ;;  %1056 = vst [vmem:[#allocation4 + $0x48] sm:$0xff] (!%p1831_p4), %v2643_v37 }
 0x2f2   : > { %1057 = vst [vmem:[#allocation4 + $0x50] sm:$0xff] (!%p1831_p4), %v2643_v37  ;;  %1058 = vst [vmem:[#allocation4 + $0x58] sm:$0xff] (!%p1831_p4), %v2643_v37 }
 0x2f3   : > { %1059 = vst [vmem:[#allocation4 + $0x60] sm:$0xff] (!%p1831_p4), %v2643_v37  ;;  %1060 = vst [vmem:[#allocation4 + $0x68] sm:$0xff] (!%p1831_p4), %v2643_v37 }
 0x2f4   : > { %1061 = vst [vmem:[#allocation4 + $0x70] sm:$0xff] %v2643_v37  ;;  %1062 = vst [vmem:[#allocation4 + $0x78] sm:$0xff] %v2643_v37 }
 0x2f5 PF: > { %s3300_s27 = sld [smem:[#allocation19_spill]]  ;;  %p1063_p13 = scmp.lt.s32.totalorder %s2617_s29, 0 }
 0x2f6   : > { %s1064_s2 = ssub.s32 0, %s2617_s29 }
 0x2f7   : > { %s1832_s19 = smin.u32 %s2617_s29, %s1064_s2 }
 0x2f8   : > { %s1066_s14 = sand.u32 1, %s1832_s19  }
 0x2f9   : > { %s1067_s28 = ssub.s32 0, %s1066_s14 }
 0x2fa   : > { %s3342_s28 = smov (!%p1063_p13, %s1067_s28), %s1066_s14 }
 0x2fb   : > { %s1833_s11 = sshll.u32 %s3300_s27, 7  ;;  %p1070_p2 = scmp.eq.s32.totalorder %s3342_s28, 0 }
 0x2fc   : > { %p1834_p3 = scmp.ne.s32.totalorder %s3342_s28, 0 }
 0x2fd   : > { %s1106_s21 = sshra.s32 (!%p1834_p3), %s1833_s11, 4  ;;  %v2357_v19 = vld [vmem:[%s2951_s20] sm:$0xff] (!%p1834_p3)   ;;  %v2359_v46 = vld [vmem:[%s2951_s20 + $0x8] sm:$0xff] (!%p1834_p3)   ;;  %v2361_v48 = vld [vmem:[%s2951_s20 + $0x10] sm:$0xff] (!%p1834_p3)  }
 0x2fe   : > { %1073 = sbr.rel (%p1834_p3) target bundleno = 1027 (0x403), region = 76  ;;  %s1835_s24 = sshll.u32 (!%p1834_p3), %s1106_s21, 3  ;;  %v2358_v38 = vld [vmem:[%s2951_s20 + $0x20] sm:$0xff] (!%p1834_p3)   ;;  %2057 = vmatprep.mubr.bf16.mxu0 (!%p1834_p3), %v2357_v19  ;;  %v2360_v47 = vld [vmem:[%s2951_s20 + $0x28] sm:$0xff] (!%p1834_p3)   ;;  %v2362_v49 = vld [vmem:[%s2951_s20 + $0x30] sm:$0xff] (!%p1834_p3)  }
 0x2ff   : > { %s3085_s29 = scalar_lea.vmem (!%p1834_p3), [#allocation2], %s1835_s24  ;;  %2065 = vmatprep.mubr.bf16.mxu1 (!%p1834_p3), %v2358_v38  ;;  %v2363_v50 = vld [vmem:[%s2951_s20 + $0x18] sm:$0xff] (!%p1834_p3)   ;;  %v1076_v52 = vld [vmem:[#allocation4 + $0x10] sm:$0xff] (!%p1834_p3)  ;;  %v1074_v54 = vld [vmem:[#allocation4] sm:$0xff] (!%p1834_p3) }
 0x300   : > { %v1110_v39 = vld [vmem:[%s3085_s29] sm:$0xff] (!%p1834_p3)  ;;  %v1111_v40 = vld [vmem:[%s3085_s29 + $0x8] sm:$0xff] (!%p1834_p3)  ;;  %v1112_v41 = vld [vmem:[%s3085_s29 + $0x10] sm:$0xff] (!%p1834_p3) }
 0x301   : > { %2041 = vmatprep.subr.bf16.mxu0 (!%p1834_p3), %v1110_v39  ;;  %2137 = vmatprep.subr.bf16.mxu1 (!%p1834_p3), %v1110_v39  ;;  %v1113_v25 = vld [vmem:[%s3085_s29 + $0x18] sm:$0xff] (!%p1834_p3)  ;;  %v1114_v42 = vld [vmem:[%s3085_s29 + $0x20] sm:$0xff] (!%p1834_p3)  ;;  %v1115_v43 = vld [vmem:[%s3085_s29 + $0x28] sm:$0xff] (!%p1834_p3) }
 0x302   : > { %2042 = vmatpush3.bf16.msra.mxu0 (!%p1834_p3), %v1110_v39  ;;  %2145 = vmatpush3.bf16.msra.mxu1 (!%p1834_p3), %v1110_v39  ;;  %v1116_v44 = vld [vmem:[%s3085_s29 + $0x30] sm:$0xff] (!%p1834_p3)  ;;  %v1117_v45 = vld [vmem:[%s3085_s29 + $0x38] sm:$0xff] (!%p1834_p3)  ;;  %v1082_v55 = vld [vmem:[#allocation4 + $0x40] sm:$0xff] (!%p1834_p3) }
 0x303   : > { %2043 = vmatprep.subr.bf16.mxu0 (!%p1834_p3), %v1111_v40  ;;  %2138 = vmatprep.subr.bf16.mxu1 (!%p1834_p3), %v1111_v40  ;;  %v2364_v51 = vld [vmem:[%s2951_s20 + $0x38] sm:$0xff] (!%p1834_p3)   ;;  %v1084_v53 = vld [vmem:[#allocation4 + $0x50] sm:$0xff] (!%p1834_p3)  ;;  %v1075_v0 = vld [vmem:[#allocation4 + $0x8] sm:$0xff] (!%p1834_p3) }
 0x304   : > { %v1077_v58 = vld [vmem:[#allocation4 + $0x18] sm:$0xff] (!%p1834_p3)  ;;  %v1083_v1 = vld [vmem:[#allocation4 + $0x48] sm:$0xff] (!%p1834_p3)  ;;  %v1080_v12 = vld [vmem:[#allocation4 + $0x30] sm:$0xff] (!%p1834_p3) }
 0x305   : > { %v1085_v59 = vld [vmem:[#allocation4 + $0x58] sm:$0xff]  ;;  %v1088_v13 = vld [vmem:[#allocation4 + $0x70] sm:$0xff]  ;;  %v1078_v14 = vld [vmem:[#allocation4 + $0x20] sm:$0xff] }
 0x306   : > { %2044 = vmatpush3.bf16.msra.mxu0 %v1111_v40  ;;  %2146 = vmatpush3.bf16.msra.mxu1 %v1111_v40  ;;  %v1086_v15 = vld [vmem:[#allocation4 + $0x60] sm:$0xff]  ;;  %v1081_v18 = vld [vmem:[#allocation4 + $0x38] sm:$0xff]  ;;  %v1079_v26 = vld [vmem:[#allocation4 + $0x28] sm:$0xff] }
 0x307   : > { %2045 = vmatprep.subr.bf16.mxu0 %v1112_v41  ;;  %2139 = vmatprep.subr.bf16.mxu1 %v1112_v41  ;;  %v1089_v20 = vld [vmem:[#allocation4 + $0x78] sm:$0xff]  ;;  %v1087_v27 = vld [vmem:[#allocation4 + $0x68] sm:$0xff] }
 0x30a   : > { %2046 = vmatpush3.bf16.msra.mxu0 %v1112_v41  ;;  %2147 = vmatpush3.bf16.msra.mxu1 %v1112_v41 }
 0x30b   : > { %2047 = vmatprep.subr.bf16.mxu0 %v1113_v25  ;;  %2140 = vmatprep.subr.bf16.mxu1 %v1113_v25 }
 0x30e   : > { %2048 = vmatpush3.bf16.msra.mxu0 %v1113_v25  ;;  %2148 = vmatpush3.bf16.msra.mxu1 %v1113_v25 }
 0x30f   : > { %2049 = vmatprep.subr.bf16.mxu0 %v1114_v42  ;;  %2141 = vmatprep.subr.bf16.mxu1 %v1114_v42 }
 0x312   : > { %2050 = vmatpush3.bf16.msra.mxu0 %v1114_v42  ;;  %2149 = vmatpush3.bf16.msra.mxu1 %v1114_v42 }
 0x313   : > { %2051 = vmatprep.subr.bf16.mxu0 %v1115_v43  ;;  %2142 = vmatprep.subr.bf16.mxu1 %v1115_v43 }
 0x316   : > { %2052 = vmatpush3.bf16.msra.mxu0 %v1115_v43  ;;  %2150 = vmatpush3.bf16.msra.mxu1 %v1115_v43 }
 0x317   : > { %2053 = vmatprep.subr.bf16.mxu0 %v1116_v44  ;;  %2143 = vmatprep.subr.bf16.mxu1 %v1116_v44 }
 0x31a   : > { %2054 = vmatpush3.bf16.msra.mxu0 %v1116_v44  ;;  %2151 = vmatpush3.bf16.msra.mxu1 %v1116_v44 }
 0x31b   : > { %2055 = vmatprep.subr.bf16.mxu0 %v1117_v45  ;;  %2144 = vmatprep.subr.bf16.mxu1 %v1117_v45 }
 0x31e   : > { %2056 = vmatpush3.bf16.msra.mxu0 %v1117_v45  ;;  %2152 = vmatpush3.bf16.msra.mxu1 %v1117_v45 }
 0x321   : > { %2058 = vmatmul.mubr.bf16.vlgmr.msra.gmra.mrb[0].mxu0 %v2359_v46  ;;  %2066 = vmatmul.mubr.bf16.vlgmr.msra.gmra.mrb[0].mxu1 %v2360_v47 }
 0x322   : > { %2061 = vmatprep.mubr.bf16.mxu0 %v2361_v48  ;;  %2069 = vmatprep.mubr.bf16.mxu1 %v2362_v49 }
 0x329   : > { %2062 = vmatmul.mubr.bf16.gmra.mrb[4].mxu0 %v2363_v50  ;;  %2070 = vmatmul.mubr.bf16.gmra.mrb[4].mxu1 %v2364_v51 }
 0x3f4   : > { %v2059_v56 = vpop.f32.mrb[0].mxu0  ;;  %v2067_v57 = vpop.f32.mrb[0].mxu1 }
 0x3f5   : > { %v1265_v60 = vadd.f32 %v2059_v56, %v1076_v52  ;;  %v1273_v61 = vadd.f32 %v2067_v57, %v1084_v53  ;;  %v1200_v62 = vpop.f32.mrb[1].mxu0  ;;  %v1232_v63 = vpop.f32.mrb[1].mxu1 }
 0x3f6   : > { %v1263_v2 = vadd.f32 %v1200_v62, %v1074_v54  ;;  %v1271_v3 = vadd.f32 %v1232_v63, %v1082_v55  ;;  %v2060_v4 = vpop.f32.mrb[2].mxu0  ;;  %v2068_v5 = vpop.f32.mrb[2].mxu1 }
 0x3f7   : > { %1281 = vst [vmem:[#allocation4 + $0x10] sm:$0xff] %v1265_v60  ;;  %1289 = vst [vmem:[#allocation4 + $0x50] sm:$0xff] %v1273_v61  ;;  %v1266_v6 = vadd.f32 %v2060_v4, %v1077_v58  ;;  %v1274_v7 = vadd.f32 %v2068_v5, %v1085_v59  ;;  %v1203_v8 = vpop.f32.mrb[3].mxu0  ;;  %v1235_v9 = vpop.f32.mrb[3].mxu1 }
 0x3f8   : > { %1279 = vst [vmem:[#allocation4] sm:$0xff] %v1263_v2  ;;  %1287 = vst [vmem:[#allocation4 + $0x40] sm:$0xff] %v1271_v3  ;;  %v1264_v10 = vadd.f32 %v1203_v8, %v1075_v0  ;;  %v1272_v11 = vadd.f32 %v1235_v9, %v1083_v1 }
 0x3f9   : > { %1282 = vst [vmem:[#allocation4 + $0x18] sm:$0xff] %v1266_v6  ;;  %1290 = vst [vmem:[#allocation4 + $0x58] sm:$0xff] %v1274_v7 }
 0x3fa   : > { %1280 = vst [vmem:[#allocation4 + $0x8] sm:$0xff] %v1264_v10  ;;  %1288 = vst [vmem:[#allocation4 + $0x48] sm:$0xff] %v1272_v11 }
 0x3fc   : > { %v2063_v16 = vpop.f32.mrb[4].mxu0  ;;  %v2071_v17 = vpop.f32.mrb[4].mxu1 }
 0x3fd   : > { %v1269_v21 = vadd.f32 %v2063_v16, %v1080_v12  ;;  %v1277_v22 = vadd.f32 %v2071_v17, %v1088_v13  ;;  %v1216_v23 = vpop.f32.mrb[5].mxu0  ;;  %v1248_v24 = vpop.f32.mrb[5].mxu1 }
 0x3fe   : > { %v1267_v28 = vadd.f32 %v1216_v23, %v1078_v14  ;;  %v1275_v29 = vadd.f32 %v1248_v24, %v1086_v15  ;;  %v2064_v30 = vpop.f32.mrb[6].mxu0  ;;  %v2072_v31 = vpop.f32.mrb[6].mxu1 }
 0x3ff   : > { %1285 = vst [vmem:[#allocation4 + $0x30] sm:$0xff] %v1269_v21  ;;  %1293 = vst [vmem:[#allocation4 + $0x70] sm:$0xff] %v1277_v22  ;;  %v1270_v32 = vadd.f32 %v2064_v30, %v1081_v18  ;;  %v1278_v33 = vadd.f32 %v2072_v31, %v1089_v20  ;;  %v1219_v34 = vpop.f32.mrb[7].mxu0  ;;  %v1251_v35 = vpop.f32.mrb[7].mxu1 }
 0x400   : > { %1283 = vst [vmem:[#allocation4 + $0x20] sm:$0xff] %v1267_v28  ;;  %1291 = vst [vmem:[#allocation4 + $0x60] sm:$0xff] %v1275_v29  ;;  %v1268_v36 = vadd.f32 %v1219_v34, %v1079_v26  ;;  %v1276_v37 = vadd.f32 %v1251_v35, %v1087_v27 }
 0x401   : > { %1286 = vst [vmem:[#allocation4 + $0x38] sm:$0xff] %v1270_v32  ;;  %1294 = vst [vmem:[#allocation4 + $0x78] sm:$0xff] %v1278_v33 }
 0x402   : > { %1284 = vst [vmem:[#allocation4 + $0x28] sm:$0xff] %v1268_v36  ;;  %1292 = vst [vmem:[#allocation4 + $0x68] sm:$0xff] %v1276_v37 }
 0x403 PF: > { %p1295_p11 = scmp.eq.s32.totalorder %s3342_s28, 1  ;;  %p1844_p6 = scmp.ne.s32.totalorder %s3342_s28, 1 }
 0x404   : > { %s1331_s12 = sshra.s32 (!%p1844_p6), %s1833_s11, 4  ;;  %v2365_v19 = vld [vmem:[%s2951_s20] sm:$0xff] (!%p1844_p6)   ;;  %v2367_v46 = vld [vmem:[%s2951_s20 + $0x8] sm:$0xff] (!%p1844_p6)   ;;  %v2369_v48 = vld [vmem:[%s2951_s20 + $0x10] sm:$0xff] (!%p1844_p6)  }
 0x405   : > { %1298 = sbr.rel (%p1844_p6) target bundleno = 1290 (0x50a), region = 80  ;;  %s1845_s3 = sshll.u32 (!%p1844_p6), %s1331_s12, 3  ;;  %v2366_v38 = vld [vmem:[%s2951_s20 + $0x20] sm:$0xff] (!%p1844_p6)   ;;  %2089 = vmatprep.mubr.bf16.mxu0 (!%p1844_p6), %v2365_v19  ;;  %v2368_v47 = vld [vmem:[%s2951_s20 + $0x28] sm:$0xff] (!%p1844_p6)   ;;  %v2370_v49 = vld [vmem:[%s2951_s20 + $0x30] sm:$0xff] (!%p1844_p6)  }
 0x406   : > { %s3107_s17 = scalar_lea.vmem (!%p1844_p6), [#allocation3], %s1845_s3  ;;  %2097 = vmatprep.mubr.bf16.mxu1 (!%p1844_p6), %v2366_v38  ;;  %v2371_v50 = vld [vmem:[%s2951_s20 + $0x18] sm:$0xff] (!%p1844_p6)   ;;  %v1301_v52 = vld [vmem:[#allocation4 + $0x10] sm:$0xff] (!%p1844_p6)  ;;  %v1299_v54 = vld [vmem:[#allocation4] sm:$0xff] (!%p1844_p6) }
 0x407   : > { %v1335_v39 = vld [vmem:[%s3107_s17] sm:$0xff] (!%p1844_p6)  ;;  %v1336_v40 = vld [vmem:[%s3107_s17 + $0x8] sm:$0xff] (!%p1844_p6)  ;;  %v1337_v41 = vld [vmem:[%s3107_s17 + $0x10] sm:$0xff] (!%p1844_p6) }
 0x408   : > { %2073 = vmatprep.subr.bf16.mxu0 (!%p1844_p6), %v1335_v39  ;;  %2153 = vmatprep.subr.bf16.mxu1 (!%p1844_p6), %v1335_v39  ;;  %v1338_v25 = vld [vmem:[%s3107_s17 + $0x18] sm:$0xff] (!%p1844_p6)  ;;  %v1339_v42 = vld [vmem:[%s3107_s17 + $0x20] sm:$0xff] (!%p1844_p6)  ;;  %v1340_v43 = vld [vmem:[%s3107_s17 + $0x28] sm:$0xff] (!%p1844_p6) }
 0x409   : > { %2074 = vmatpush3.bf16.msra.mxu0 (!%p1844_p6), %v1335_v39  ;;  %2161 = vmatpush3.bf16.msra.mxu1 (!%p1844_p6), %v1335_v39  ;;  %v1341_v44 = vld [vmem:[%s3107_s17 + $0x30] sm:$0xff] (!%p1844_p6)  ;;  %v1342_v45 = vld [vmem:[%s3107_s17 + $0x38] sm:$0xff] (!%p1844_p6)  ;;  %v1307_v55 = vld [vmem:[#allocation4 + $0x40] sm:$0xff] (!%p1844_p6) }
 0x40a   : > { %2075 = vmatprep.subr.bf16.mxu0 (!%p1844_p6), %v1336_v40  ;;  %2154 = vmatprep.subr.bf16.mxu1 (!%p1844_p6), %v1336_v40  ;;  %v2372_v51 = vld [vmem:[%s2951_s20 + $0x38] sm:$0xff] (!%p1844_p6)   ;;  %v1309_v53 = vld [vmem:[#allocation4 + $0x50] sm:$0xff] (!%p1844_p6)  ;;  %v1300_v0 = vld [vmem:[#allocation4 + $0x8] sm:$0xff] (!%p1844_p6) }
 0x40b   : > { %v1302_v58 = vld [vmem:[#allocation4 + $0x18] sm:$0xff] (!%p1844_p6)  ;;  %v1308_v1 = vld [vmem:[#allocation4 + $0x48] sm:$0xff] (!%p1844_p6)  ;;  %v1305_v12 = vld [vmem:[#allocation4 + $0x30] sm:$0xff] (!%p1844_p6) }
 0x40c   : > { %v1310_v59 = vld [vmem:[#allocation4 + $0x58] sm:$0xff]  ;;  %v1313_v13 = vld [vmem:[#allocation4 + $0x70] sm:$0xff]  ;;  %v1303_v14 = vld [vmem:[#allocation4 + $0x20] sm:$0xff] }
 0x40d   : > { %2076 = vmatpush3.bf16.msra.mxu0 %v1336_v40  ;;  %2162 = vmatpush3.bf16.msra.mxu1 %v1336_v40  ;;  %v1311_v15 = vld [vmem:[#allocation4 + $0x60] sm:$0xff]  ;;  %v1306_v18 = vld [vmem:[#allocation4 + $0x38] sm:$0xff]  ;;  %v1304_v26 = vld [vmem:[#allocation4 + $0x28] sm:$0xff] }
 0x40e   : > { %2077 = vmatprep.subr.bf16.mxu0 %v1337_v41  ;;  %2155 = vmatprep.subr.bf16.mxu1 %v1337_v41  ;;  %v1314_v20 = vld [vmem:[#allocation4 + $0x78] sm:$0xff]  ;;  %v1312_v27 = vld [vmem:[#allocation4 + $0x68] sm:$0xff] }
 0x411   : > { %2078 = vmatpush3.bf16.msra.mxu0 %v1337_v41  ;;  %2163 = vmatpush3.bf16.msra.mxu1 %v1337_v41 }
 0x412   : > { %2079 = vmatprep.subr.bf16.mxu0 %v1338_v25  ;;  %2156 = vmatprep.subr.bf16.mxu1 %v1338_v25 }
 0x415   : > { %2080 = vmatpush3.bf16.msra.mxu0 %v1338_v25  ;;  %2164 = vmatpush3.bf16.msra.mxu1 %v1338_v25 }
 0x416   : > { %2081 = vmatprep.subr.bf16.mxu0 %v1339_v42  ;;  %2157 = vmatprep.subr.bf16.mxu1 %v1339_v42 }
 0x419   : > { %2082 = vmatpush3.bf16.msra.mxu0 %v1339_v42  ;;  %2165 = vmatpush3.bf16.msra.mxu1 %v1339_v42 }
 0x41a   : > { %2083 = vmatprep.subr.bf16.mxu0 %v1340_v43  ;;  %2158 = vmatprep.subr.bf16.mxu1 %v1340_v43 }
 0x41d   : > { %2084 = vmatpush3.bf16.msra.mxu0 %v1340_v43  ;;  %2166 = vmatpush3.bf16.msra.mxu1 %v1340_v43 }
 0x41e   : > { %2085 = vmatprep.subr.bf16.mxu0 %v1341_v44  ;;  %2159 = vmatprep.subr.bf16.mxu1 %v1341_v44 }
 0x421   : > { %2086 = vmatpush3.bf16.msra.mxu0 %v1341_v44  ;;  %2167 = vmatpush3.bf16.msra.mxu1 %v1341_v44 }
 0x422   : > { %2087 = vmatprep.subr.bf16.mxu0 %v1342_v45  ;;  %2160 = vmatprep.subr.bf16.mxu1 %v1342_v45 }
 0x425   : > { %2088 = vmatpush3.bf16.msra.mxu0 %v1342_v45  ;;  %2168 = vmatpush3.bf16.msra.mxu1 %v1342_v45 }
 0x428   : > { %2090 = vmatmul.mubr.bf16.vlgmr.msra.gmra.mrb[0].mxu0 %v2367_v46  ;;  %2098 = vmatmul.mubr.bf16.vlgmr.msra.gmra.mrb[0].mxu1 %v2368_v47 }
 0x429   : > { %2093 = vmatprep.mubr.bf16.mxu0 %v2369_v48  ;;  %2101 = vmatprep.mubr.bf16.mxu1 %v2370_v49 }
 0x430   : > { %2094 = vmatmul.mubr.bf16.gmra.mrb[4].mxu0 %v2371_v50  ;;  %2102 = vmatmul.mubr.bf16.gmra.mrb[4].mxu1 %v2372_v51 }
 0x4fb   : > { %v2091_v56 = vpop.f32.mrb[0].mxu0  ;;  %v2099_v57 = vpop.f32.mrb[0].mxu1 }
 0x4fc   : > { %v1490_v60 = vadd.f32 %v2091_v56, %v1301_v52  ;;  %v1498_v61 = vadd.f32 %v2099_v57, %v1309_v53  ;;  %v1425_v62 = vpop.f32.mrb[1].mxu0  ;;  %v1457_v63 = vpop.f32.mrb[1].mxu1 }
 0x4fd   : > { %v1488_v2 = vadd.f32 %v1425_v62, %v1299_v54  ;;  %v1496_v3 = vadd.f32 %v1457_v63, %v1307_v55  ;;  %v2092_v4 = vpop.f32.mrb[2].mxu0  ;;  %v2100_v5 = vpop.f32.mrb[2].mxu1 }
 0x4fe   : > { %1506 = vst [vmem:[#allocation4 + $0x10] sm:$0xff] %v1490_v60  ;;  %1514 = vst [vmem:[#allocation4 + $0x50] sm:$0xff] %v1498_v61  ;;  %v1491_v6 = vadd.f32 %v2092_v4, %v1302_v58  ;;  %v1499_v7 = vadd.f32 %v2100_v5, %v1310_v59  ;;  %v1428_v8 = vpop.f32.mrb[3].mxu0  ;;  %v1460_v9 = vpop.f32.mrb[3].mxu1 }
 0x4ff   : > { %1504 = vst [vmem:[#allocation4] sm:$0xff] %v1488_v2  ;;  %1512 = vst [vmem:[#allocation4 + $0x40] sm:$0xff] %v1496_v3  ;;  %v1489_v10 = vadd.f32 %v1428_v8, %v1300_v0  ;;  %v1497_v11 = vadd.f32 %v1460_v9, %v1308_v1 }
 0x500   : > { %1507 = vst [vmem:[#allocation4 + $0x18] sm:$0xff] %v1491_v6  ;;  %1515 = vst [vmem:[#allocation4 + $0x58] sm:$0xff] %v1499_v7 }
 0x501   : > { %1505 = vst [vmem:[#allocation4 + $0x8] sm:$0xff] %v1489_v10  ;;  %1513 = vst [vmem:[#allocation4 + $0x48] sm:$0xff] %v1497_v11 }
 0x503   : > { %v2095_v16 = vpop.f32.mrb[4].mxu0  ;;  %v2103_v17 = vpop.f32.mrb[4].mxu1 }
 0x504   : > { %v1494_v21 = vadd.f32 %v2095_v16, %v1305_v12  ;;  %v1502_v22 = vadd.f32 %v2103_v17, %v1313_v13  ;;  %v1441_v23 = vpop.f32.mrb[5].mxu0  ;;  %v1473_v24 = vpop.f32.mrb[5].mxu1 }
 0x505   : > { %v1492_v28 = vadd.f32 %v1441_v23, %v1303_v14  ;;  %v1500_v29 = vadd.f32 %v1473_v24, %v1311_v15  ;;  %v2096_v30 = vpop.f32.mrb[6].mxu0  ;;  %v2104_v31 = vpop.f32.mrb[6].mxu1 }
 0x506   : > { %1510 = vst [vmem:[#allocation4 + $0x30] sm:$0xff] %v1494_v21  ;;  %1518 = vst [vmem:[#allocation4 + $0x70] sm:$0xff] %v1502_v22  ;;  %v1495_v32 = vadd.f32 %v2096_v30, %v1306_v18  ;;  %v1503_v33 = vadd.f32 %v2104_v31, %v1314_v20  ;;  %v1444_v34 = vpop.f32.mrb[7].mxu0  ;;  %v1476_v35 = vpop.f32.mrb[7].mxu1 }
 0x507   : > { %1508 = vst [vmem:[#allocation4 + $0x20] sm:$0xff] %v1492_v28  ;;  %1516 = vst [vmem:[#allocation4 + $0x60] sm:$0xff] %v1500_v29  ;;  %v1493_v36 = vadd.f32 %v1444_v34, %v1304_v26  ;;  %v1501_v37 = vadd.f32 %v1476_v35, %v1312_v27 }
 0x508   : > { %1511 = vst [vmem:[#allocation4 + $0x38] sm:$0xff] %v1495_v32  ;;  %1519 = vst [vmem:[#allocation4 + $0x78] sm:$0xff] %v1503_v33 }
 0x509   : > { %1509 = vst [vmem:[#allocation4 + $0x28] sm:$0xff] %v1493_v36  ;;  %1517 = vst [vmem:[#allocation4 + $0x68] sm:$0xff] %v1501_v37 }
 0x50a PF: > { %s3303_s20 = sld [smem:[#allocation19_spill]]  ;;  %s3304_s27 = sld [smem:[#allocation20_spill]] }
 0x510   : > { %p1520_p0 = scmp.eq.s32.totalorder %s3303_s20, 1  ;;  %s1854_s2 = sshll.u32 %s3304_s27, 7 }
 0x511   : > { %p1855_p7 = scmp.ne.s32.totalorder %s3303_s20, 1 }
 0x512   : > { %v1525_v19 = vld [vmem:[#allocation4] sm:$0xff] (!%p1855_p7)  ;;  %v1526_v38 = vld [vmem:[#allocation4 + $0x8] sm:$0xff] (!%p1855_p7)  ;;  %v1527_v39 = vld [vmem:[#allocation4 + $0x10] sm:$0xff] (!%p1855_p7) }
 0x513   : > { %1524 = sbr.rel (%p1855_p7) target bundleno = 1307 (0x51b), region = 84  ;;  %1541 = vst [vmem:[%s2975_s13] sm:$0xff] (!%p1855_p7), %v1525_v19  ;;  %1542 = vst [vmem:[%s2975_s13 + $0x8] sm:$0xff] (!%p1855_p7), %v1526_v38  ;;  %v1528_v40 = vld [vmem:[#allocation4 + $0x18] sm:$0xff] (!%p1855_p7)  ;;  %v1529_v41 = vld [vmem:[#allocation4 + $0x20] sm:$0xff] (!%p1855_p7) }
 0x514   : > { %1543 = vst [vmem:[%s2975_s13 + $0x10] sm:$0xff] (!%p1855_p7), %v1527_v39  ;;  %v1530_v25 = vld [vmem:[#allocation4 + $0x28] sm:$0xff] (!%p1855_p7)  ;;  %1544 = vst [vmem:[%s2975_s13 + $0x18] sm:$0xff] (!%p1855_p7), %v1528_v40  ;;  %v1531_v42 = vld [vmem:[#allocation4 + $0x30] sm:$0xff] (!%p1855_p7) }
 0x515   : > { %1545 = vst [vmem:[%s2975_s13 + $0x20] sm:$0xff] (!%p1855_p7), %v1529_v41  ;;  %1546 = vst [vmem:[%s2975_s13 + $0x28] sm:$0xff] (!%p1855_p7), %v1530_v25  ;;  %v1532_v43 = vld [vmem:[#allocation4 + $0x38] sm:$0xff] (!%p1855_p7)  ;;  %v1533_v44 = vld [vmem:[#allocation4 + $0x40] sm:$0xff] (!%p1855_p7) }
 0x516   : > { %1547 = vst [vmem:[%s2975_s13 + $0x30] sm:$0xff] (!%p1855_p7), %v1531_v42  ;;  %1548 = vst [vmem:[%s2975_s13 + $0x38] sm:$0xff] (!%p1855_p7), %v1532_v43  ;;  %v1534_v45 = vld [vmem:[#allocation4 + $0x48] sm:$0xff] (!%p1855_p7)  ;;  %v1535_v46 = vld [vmem:[#allocation4 + $0x50] sm:$0xff] (!%p1855_p7) }
 0x517   : > { %1549 = vst [vmem:[%s2975_s13 + $0x40] sm:$0xff] (!%p1855_p7), %v1533_v44  ;;  %v1536_v47 = vld [vmem:[#allocation4 + $0x58] sm:$0xff] (!%p1855_p7)  ;;  %1550 = vst [vmem:[%s2975_s13 + $0x48] sm:$0xff] (!%p1855_p7), %v1534_v45  ;;  %v1537_v48 = vld [vmem:[#allocation4 + $0x60] sm:$0xff] (!%p1855_p7) }
 0x518   : > { %1551 = vst [vmem:[%s2975_s13 + $0x50] sm:$0xff] (!%p1855_p7), %v1535_v46  ;;  %1552 = vst [vmem:[%s2975_s13 + $0x58] sm:$0xff] (!%p1855_p7), %v1536_v47  ;;  %v1538_v49 = vld [vmem:[#allocation4 + $0x68] sm:$0xff] (!%p1855_p7)  ;;  %v1539_v50 = vld [vmem:[#allocation4 + $0x70] sm:$0xff] (!%p1855_p7) }
 0x519   : > { %1553 = vst [vmem:[%s2975_s13 + $0x60] sm:$0xff] (!%p1855_p7), %v1537_v48  ;;  %1554 = vst [vmem:[%s2975_s13 + $0x68] sm:$0xff] (!%p1855_p7), %v1538_v49  ;;  %v1540_v51 = vld [vmem:[#allocation4 + $0x78] sm:$0xff] (!%p1855_p7) }
 0x51a   : > { %1555 = vst [vmem:[%s2975_s13 + $0x70] sm:$0xff] %v1539_v50  ;;  %1556 = vst [vmem:[%s2975_s13 + $0x78] sm:$0xff] %v1540_v51 }
 0x51b PF: > { %p1557_p5 = pnand %p1520_p0, %p1070_p2 }
 0x51c   : > { %v1561_v52 = vld [vmem:[#allocation4] sm:$0xff] (!%p1557_p5)  ;;  %v1562_v53 = vld [vmem:[#allocation4 + $0x8] sm:$0xff] (!%p1557_p5)  ;;  %s1585_s14 = sshra.s32 (!%p1557_p5), %s1854_s2, 4  ;;  %v1563_v54 = vld [vmem:[#allocation4 + $0x10] sm:$0xff] (!%p1557_p5) }
 0x51d   : > { %1560 = sbr.rel (%p1557_p5) target bundleno = 1317 (0x525), region = 88  ;;  %v1577_v55 = vpack.c.bf16 (!%p1557_p5), %v1562_v53, %v1561_v52  ;;  %s1856_s18 = sshll.u32 (!%p1557_p5), %s1585_s14, 3  ;;  %v1564_v56 = vld [vmem:[#allocation4 + $0x18] sm:$0xff] (!%p1557_p5)  ;;  %v1565_v57 = vld [vmem:[#allocation4 + $0x20] sm:$0xff] (!%p1557_p5)  ;;  %v1566_v58 = vld [vmem:[#allocation4 + $0x28] sm:$0xff] (!%p1557_p5) }
 0x51e   : > { %v1578_v59 = vpack.c.bf16 (!%p1557_p5), %v1564_v56, %v1563_v54  ;;  %v1579_v60 = vpack.c.bf16 (!%p1557_p5), %v1566_v58, %v1565_v57  ;;  %v1567_v61 = vld [vmem:[#allocation4 + $0x30] sm:$0xff] (!%p1557_p5)  ;;  %v1568_v62 = vld [vmem:[#allocation4 + $0x38] sm:$0xff] (!%p1557_p5)  ;;  %v1569_v63 = vld [vmem:[#allocation4 + $0x40] sm:$0xff] (!%p1557_p5)  ;;  %s1588_s21 = scalar_lea.vmem (!%p1557_p5), [#allocation3], %s1856_s18 }
 0x51f   : > { %1589 = vst [vmem:[%s1588_s21] sm:$0xff] (!%p1557_p5), %v1577_v55  ;;  %v1580_v0 = vpack.c.bf16 (!%p1557_p5), %v1568_v62, %v1567_v61  ;;  %v1570_v1 = vld [vmem:[#allocation4 + $0x48] sm:$0xff] (!%p1557_p5)  ;;  %v1571_v2 = vld [vmem:[#allocation4 + $0x50] sm:$0xff] (!%p1557_p5)  ;;  %v1572_v3 = vld [vmem:[#allocation4 + $0x58] sm:$0xff] (!%p1557_p5) }
 0x520   : > { %1590 = vst [vmem:[%s1588_s21 + $0x8] sm:$0xff] (!%p1557_p5), %v1578_v59  ;;  %1591 = vst [vmem:[%s1588_s21 + $0x10] sm:$0xff] (!%p1557_p5), %v1579_v60  ;;  %v1581_v4 = vpack.c.bf16 (!%p1557_p5), %v1570_v1, %v1569_v63  ;;  %v1582_v5 = vpack.c.bf16 (!%p1557_p5), %v1572_v3, %v1571_v2  ;;  %v1573_v6 = vld [vmem:[#allocation4 + $0x60] sm:$0xff] (!%p1557_p5)  ;;  %v1574_v7 = vld [vmem:[#allocation4 + $0x68] sm:$0xff] (!%p1557_p5) }
 0x521   : > { %v1575_v8 = vld [vmem:[#allocation4 + $0x70] sm:$0xff] (!%p1557_p5)  ;;  %1592 = vst [vmem:[%s1588_s21 + $0x18] sm:$0xff] (!%p1557_p5), %v1580_v0  ;;  %v1583_v9 = vpack.c.bf16 (!%p1557_p5), %v1574_v7, %v1573_v6  ;;  %v1576_v10 = vld [vmem:[#allocation4 + $0x78] sm:$0xff] (!%p1557_p5) }
 0x522   : > { %1593 = vst [vmem:[%s1588_s21 + $0x20] sm:$0xff] (!%p1557_p5), %v1581_v4  ;;  %1594 = vst [vmem:[%s1588_s21 + $0x28] sm:$0xff] (!%p1557_p5), %v1582_v5  ;;  %v1584_v11 = vpack.c.bf16 (!%p1557_p5), %v1576_v10, %v1575_v8 }
 0x523   : > { %1595 = vst [vmem:[%s1588_s21 + $0x30] sm:$0xff] (!%p1557_p5), %v1583_v9 }
 0x524   : > { %1596 = vst [vmem:[%s1588_s21 + $0x38] sm:$0xff] %v1584_v11 }
 0x525 PF: > { %p1597_p9 = pnand %p1520_p0, %p1295_p11 }
 0x526   : > { %v1601_v12 = vld [vmem:[#allocation4] sm:$0xff] (!%p1597_p9)  ;;  %v1602_v13 = vld [vmem:[#allocation4 + $0x8] sm:$0xff] (!%p1597_p9)  ;;  %s1625_s6 = sshra.s32 (!%p1597_p9), %s1854_s2, 4  ;;  %v1603_v14 = vld [vmem:[#allocation4 + $0x10] sm:$0xff] (!%p1597_p9) }
 0x527   : > { %1600 = sbr.rel (%p1597_p9) target bundleno = 1327 (0x52f), region = 92  ;;  %v1617_v15 = vpack.c.bf16 (!%p1597_p9), %v1602_v13, %v1601_v12  ;;  %s1857_s12 = sshll.u32 (!%p1597_p9), %s1625_s6, 3  ;;  %v1604_v16 = vld [vmem:[#allocation4 + $0x18] sm:$0xff] (!%p1597_p9)  ;;  %v1605_v17 = vld [vmem:[#allocation4 + $0x20] sm:$0xff] (!%p1597_p9)  ;;  %v1606_v18 = vld [vmem:[#allocation4 + $0x28] sm:$0xff] (!%p1597_p9) }
 0x528   : > { %v1618_v20 = vpack.c.bf16 (!%p1597_p9), %v1604_v16, %v1603_v14  ;;  %v1619_v21 = vpack.c.bf16 (!%p1597_p9), %v1606_v18, %v1605_v17  ;;  %v1607_v22 = vld [vmem:[#allocation4 + $0x30] sm:$0xff] (!%p1597_p9)  ;;  %v1608_v23 = vld [vmem:[#allocation4 + $0x38] sm:$0xff] (!%p1597_p9)  ;;  %v1609_v24 = vld [vmem:[#allocation4 + $0x40] sm:$0xff] (!%p1597_p9)  ;;  %s1628_s28 = scalar_lea.vmem (!%p1597_p9), [#allocation2], %s1857_s12 }
 0x529   : > { %1629 = vst [vmem:[%s1628_s28] sm:$0xff] (!%p1597_p9), %v1617_v15  ;;  %v1620_v26 = vpack.c.bf16 (!%p1597_p9), %v1608_v23, %v1607_v22  ;;  %v1610_v27 = vld [vmem:[#allocation4 + $0x48] sm:$0xff] (!%p1597_p9)  ;;  %v1611_v28 = vld [vmem:[#allocation4 + $0x50] sm:$0xff] (!%p1597_p9)  ;;  %v1612_v29 = vld [vmem:[#allocation4 + $0x58] sm:$0xff] (!%p1597_p9) }
 0x52a   : > { %1630 = vst [vmem:[%s1628_s28 + $0x8] sm:$0xff] (!%p1597_p9), %v1618_v20  ;;  %1631 = vst [vmem:[%s1628_s28 + $0x10] sm:$0xff] (!%p1597_p9), %v1619_v21  ;;  %v1621_v30 = vpack.c.bf16 (!%p1597_p9), %v1610_v27, %v1609_v24  ;;  %v1622_v31 = vpack.c.bf16 (!%p1597_p9), %v1612_v29, %v1611_v28  ;;  %v1613_v32 = vld [vmem:[#allocation4 + $0x60] sm:$0xff] (!%p1597_p9)  ;;  %v1614_v33 = vld [vmem:[#allocation4 + $0x68] sm:$0xff] (!%p1597_p9) }
 0x52b   : > { %v1615_v34 = vld [vmem:[#allocation4 + $0x70] sm:$0xff] (!%p1597_p9)  ;;  %1632 = vst [vmem:[%s1628_s28 + $0x18] sm:$0xff] (!%p1597_p9), %v1620_v26  ;;  %v1623_v35 = vpack.c.bf16 (!%p1597_p9), %v1614_v33, %v1613_v32  ;;  %v1616_v36 = vld [vmem:[#allocation4 + $0x78] sm:$0xff] (!%p1597_p9) }
 0x52c   : > { %1633 = vst [vmem:[%s1628_s28 + $0x20] sm:$0xff] (!%p1597_p9), %v1621_v30  ;;  %1634 = vst [vmem:[%s1628_s28 + $0x28] sm:$0xff] (!%p1597_p9), %v1622_v31  ;;  %v1624_v37 = vpack.c.bf16 (!%p1597_p9), %v1616_v36, %v1615_v34 }
 0x52d   : > { %1635 = vst [vmem:[%s1628_s28 + $0x30] sm:$0xff] (!%p1597_p9), %v1623_v35 }
 0x52e   : > { %1636 = vst [vmem:[%s1628_s28 + $0x38] sm:$0xff] %v1624_v37 }
 0x52f PF: > { %s3309_s3 = sld [smem:[#allocation20_spill]]  ;;  %s3310_s17 = sld [smem:[#allocation22_spill]] }
 0x530   : > { %s3311_s19 = sld [smem:[#allocation28_spill]]  ;;  %s1651_s14 = sshll.u32 %s2975_s13, 4  ;;  %s3161_s14 = int_to_ptr.vmem [resolvable:$true] %s1651_s14 }
 0x531   : > { %s3165_s18 = scalar_lea.sflag [#allocation7], %s334_s16  ;;  %s2487_s21 = scalar_lea.vmem %s3161_s14, 2048 }
 0x532   : > { %p2488_p10 = scmp.ne.s32.totalorder %s3161_s14, %s2487_s21  ;;  %s2644_s24 = smov [#allocation13]  }
 0x533   : > { %s2491_s29 = sshll.u32 %s2644_s24, 4  ;;  %s2492_s29 = int_to_ptr.vmem [resolvable:$false] %s2491_s29 }
 0x534   : > { %s2493_s6 = scalar_lea.vmem %s2492_s29, 4096  ;;  %p2494_p4 = scmp.lt.s32.totalorder %s3161_s14, %s2492_s29 }
 0x535   : > { %s1864_s20 = sshll.u32 %s3309_s3, 11  ;;  %p3312_p12 = scmp.ne.s32.totalorder %s3310_s17, 0 }
 0x536   : > { %s3158_s11 = scalar_lea.hbm %s3311_s19, %s1864_s20  ;;  %p2495_p13 = scmp.lt.s32.totalorder %s2493_s6, %s2487_s21 }
 0x537   : > { %p2489_p1 = pnand %p2488_p10, %p3312_p12 }
 0x538   : > { %p2496_p2 = por %p2495_p13, %p2494_p4 }
 0x539   : > { %p2490_p8 = pneg %p2489_p1 }
 0x53b   : > { %p2497_p3 = pnand %p2496_p2, %p2490_p8 }
 0x53d   : > { %2500 = shalt.err (!%p2497_p3)
}
 0x53e   : > { %s2501_s16 = scalar_lea.hbm %s3158_s11, 2048  ;;  %s2505_s28 = scalar_lea.hbm %s3311_s19, 4096 }
 0x53f   : > { %p2502_p11 = scmp.ne.s32.totalorder %s3158_s11, %s2501_s16  ;;  %p2506_p7 = scmp.lt.u32.totalorder %s3158_s11, %s3311_s19 }
 0x540   : > { %p2507_p5 = scmp.lt.u32.totalorder %s2505_s28, %s2501_s16  ;;  %p2509_p10 = scmp.lt.u32.totalorder %s2501_s16, %s3158_s11 }
 0x541   : > { %p2503_p6 = pnand %p2502_p11, %p3312_p12 }
 0x542   : > { %p2508_p9 = por %p2507_p5, %p2506_p7 }
 0x543   : > { %p2504_p0 = pneg %p2503_p6 }
 0x544   : > { %p2510_p1 = por %p2509_p10, %p2508_p9 }
 0x546   : > { %p2511_p8 = pnand %p2510_p1, %p2504_p0 }
 0x548   : > { %2514 = shalt.err (!%p2511_p8)
}
 0x549   : > { %s2645_s27 = smov 128   ;;  %s2646_s2 = smov 8  }
 0x54a   : > { %2183 = dma.vmem_to_hbm [thread:$0]  (%p3312_p12), %s3161_s14, 2048, %s3158_s11, %s3165_s18, %s2645_s27, %s2645_s27, %s2646_s2  }
 0x54b PF: > { %s3313_s21 = sld [smem:[#allocation21_spill]]  ;;  %s3314_s24 = sld [smem:[#allocation18_spill]] }
 0x54c   : > { %s3315_s29 = sld [smem:[#allocation23_spill]] }
 0x551   : > { %p2210_p4 = scmp.ge.s32.totalorder %s3313_s21, 2  ;;  %s1666_s6 = sand.u32 1, %s3314_s24  }
 0x552   : > { %p3316_p13 = scmp.ne.s32.totalorder %s3315_s29, 0  ;;  %s1667_s16 = scalar_lea.sflag [#allocation7], %s1666_s6 }
 0x554   : > { %p2200_p2 = pnand %p2210_p4, %p3316_p13 }
 0x556   : > { %2580 = dma.done.wait (!%p2200_p2), %s1667_s16, 2048  }
 0x557   : > { %2582 = vsyncadd (!%p2200_p2), %s1667_s16, 4294965248  ;;  %s24_s13 = sadd.s32 1, %s3313_s21   ;;  %s3318_s21 = smov %s2589_s22 }
 0x558   : > { %p3194_p3 = scmp.ge.s32.totalorder %s24_s13, 18   ;;  %s3319_s22 = smov %s2593_s23 }
 0x559   : > { %s3320_s23 = smov %s2909_s9  ;;  %s3321_s24 = smov %s2601_s25 }
 0x55a   : > { %s3322_s25 = smov %s2605_s26  ;;  %s3323_s26 = smov %s2904_s1 }
 0x55b   : > { %s3324_s27 = smov %s2621_s30  ;;  %s3325_s28 = smov %s2625_s7 }
 0x55c   : > { %s3326_s29 = smov %s2629_s8  ;;  %s3327_s30 = smov %s3332_s15 }
 0x55d   : > { %s3328_s7 = smov %s3336_s5  ;;  %s3329_s8 = smov %s3340_s10 }
 0x55e   : > { %s3330_s9 = smov %s24_s13  ;;  %23 = sbr.rel (!%p3194_p3) target bundleno = 18 (0x12), region = 137 }
 0x565   :  { %1672 = vsyncpa [#allocation6], 1 }
 0x566   :  { %1674 = vsyncpa [#allocation6 + $0x1], 1 }
 0x567   :  { %1675 = vsyncpa [#allocation9], 1 }
 0x568   :  { %1676 = vsyncpa [#allocation12], 1 }
 0x569   :  { %1677 = vsyncpa [#allocation7], 1 }
 0x56a   :  { %1679 = vsyncpa [#allocation7 + $0x1], 1 }

</bundles_post_ra>
